<compile_context>
chip_gen: v6e
topology: v6e:2x2x1
jax: 0.10.0
libtpu: 0.0.40
codegen_flags: <defaults>
</compile_context>

<pallas_src>
import functools

import jax
import jax.numpy as jnp
from jax import lax
from jax.experimental import pallas as pl
from jax.experimental.pallas import tpu as pltpu

KSIZE = 7
PAD = 3  # padding = 3 for kernel_size = 7 (same as the PyTorch module)
_NEG_INF = float("-inf")


def _round_up(x, m):
    return (x + m - 1) // m * m


def _vmem_capacity_bytes():
    try:
        return int(pltpu.get_tpu_info().vmem_capacity_bytes)
    except Exception:
        return 64 << 20  # conservative: v7x per-TensorCore VMEM


def _largest_divisor_leq(n, limit):
    for d in range(max(1, min(n, limit)), 0, -1):
        if n % d == 0:
            return d
    return 1


def _spatial_attention_kernel(w_ref, col_ref, x_ref, o_ref, sum_ref, max_ref, *,
                              total_c, tc, ch, n_chunks, rem, need_mask,
                              tb, H, W, HW, HWP):
    """Grid = (B // tb, cdiv(C, tc)); the channel axis (1) is the reduction axis.

    w_ref   : SMEM (2*7*7,) f32        flattened conv1 weight (out=1, in=2, 7, 7)
    col_ref : VMEM (1, HWP) int32      column index of each flat pixel (pad < 0)
    x_ref   : VMEM (tb, tc, HW)        one channel block of tb images, lane dense
    o_ref   : VMEM (tb, 1, HW)         written only on the last channel block
    sum_ref : VMEM (tb, ch, HWP) f32   sublane-parallel running channel sums
    max_ref : VMEM (tb, ch, HWP) f32   sublane-parallel running channel maxima
    """
    c_idx = pl.program_id(1)
    n_c = pl.num_programs(1)

    # ---- init running reductions on the first channel block ----
    @pl.when(c_idx == 0)
    def _():
        sum_ref[...] = jnp.zeros_like(sum_ref)
        max_ref[...] = jnp.full_like(max_ref, _NEG_INF)

    # ---- stream this channel block: sublane-parallel partial sum / max ----
    c_base = c_idx * tc
    if need_mask:
        sub_iota = lax.broadcasted_iota(jnp.int32, (ch, HW), 0)  # hoisted

    for b in range(tb):                       # static
        for j in range(n_chunks):             # static, fully unrolled
            start = j * ch
            blk = x_ref[b, pl.ds(start, ch), :].astype(jnp.float32)   # (ch, HW)
            if need_mask:
                valid = sub_iota < (total_c - c_base - start)
                blk_s = jnp.where(valid, blk, 0.0)
                blk_m = jnp.where(valid, blk, _NEG_INF)
            else:
                blk_s = blk
                blk_m = blk
            sum_ref[b, :, pl.ds(0, HW)] = sum_ref[b, :, pl.ds(0, HW)] + blk_s
            max_ref[b, :, pl.ds(0, HW)] = jnp.maximum(
                max_ref[b, :, pl.ds(0, HW)], blk_m)
        if rem:                               # static ragged tail (nc == 1 only)
            start = n_chunks * ch
            blk = x_ref[b, pl.ds(start, rem), :].astype(jnp.float32)  # (rem, HW)
            sum_ref[b, pl.ds(0, rem), pl.ds(0, HW)] = (
                sum_ref[b, pl.ds(0, rem), pl.ds(0, HW)] + blk)
            max_ref[b, pl.ds(0, rem), pl.ds(0, HW)] = jnp.maximum(
                max_ref[b, pl.ds(0, rem), pl.ds(0, HW)], blk)

    # ---- finalize on the last channel block: 7x7 conv + sigmoid ----
    @pl.when(c_idx == n_c - 1)
    def _():
        col = col_ref[...]                                     # (1, HWP) int32
        flat = lax.broadcasted_iota(jnp.int32, (1, HWP), 1)    # flat pixel id
        inv_c = 1.0 / total_c

        for b in range(tb):                   # static
            avg = jnp.sum(sum_ref[b], axis=0, keepdims=True) * inv_c  # (1, HWP)
            mx = jnp.max(max_ref[b], axis=0, keepdims=True)           # (1, HWP)
            planes = (avg, mx)        # order matches torch.cat([avg, max])

            # Row-filtered vectors: rows[di][p] = sum_{c,dj} K[c,di,dj] *
            # plane_c[row(p), col(p)+dj-3] (zero outside [0, W)).
            # 12 lane rolls total; 7 independent MAC chains (ILP).
            rows = [jnp.zeros((1, HWP), jnp.float32) for _ in range(KSIZE)]
            for c in range(2):
                for dj in range(KSIZE):
                    s_col = dj - PAD
                    shifted = planes[c] if s_col == 0 else pltpu.roll(
                        planes[c], shift=(-s_col) % HWP, axis=1)
                    cvalid = jnp.logical_and(col + s_col >= 0, col + s_col < W)
                    shifted = jnp.where(cvalid, shifted, 0.0)
                    for di in range(KSIZE):
                        w_s = w_ref[(c * KSIZE + di) * KSIZE + dj]
                        rows[di] = rows[di] + w_s * shifted

            # Vertical combine: out[p] = sum_di rows[di][p + (di-3)*W] where
            # the source row stays in [0, H).  Row masks are contiguous flat
            # ranges, so a plain iota threshold suffices.  6 more rolls.
            acc = jnp.zeros((1, HWP), jnp.float32)
            for di in range(KSIZE):
                s_row = (di - PAD) * W
                term = rows[di] if s_row == 0 else pltpu.roll(
                    rows[di], shift=(-s_row) % HWP, axis=1)
                rvalid = jnp.logical_and(flat >= (PAD - di) * W,
                                         flat < (H - (di - PAD)) * W)
                acc = acc + jnp.where(rvalid, term, 0.0)

            o_ref[b] = jax.nn.sigmoid(acc[:, :HW]).astype(o_ref.dtype)


@jax.jit
def spatial_attention(x, weight):
    """x: (B, C, H, W), weight: (1, 2, 7, 7), no bias -> (B, 1, H, W)."""
    B, C, H, W = x.shape
    HW = H * W
    HWP = _round_up(HW, 128)
    itemsize = jnp.dtype(x.dtype).itemsize
    sublane = {4: 8, 2: 16, 1: 32}.get(itemsize, 8)

    # ---- channel tiling sized from the padded (8,128) VMEM footprint ----
    vmem_cap = _vmem_capacity_bytes()
    block_budget = max(2 << 20, min(8 << 20, vmem_cap // 16))  # per x buffer
    row_bytes = HWP * itemsize                  # one lane-padded channel row
    ch = min(C, sublane)                        # chunk = one sublane tile
    max_chunks = 128                            # bounds unrolled code size
    tc_cap = max(ch, min(max_chunks * ch,
                         (block_budget // row_bytes) // ch * ch))

    if C <= tc_cap:
        tc, nc = C, 1                           # single channel block
        n_chunks, rem = divmod(C, ch)
        need_mask = False
    else:
        tc = 0
        for cand in range(tc_cap, ch - 1, -ch):  # prefer tc | C (no masking)
            if C % cand == 0:
                tc = cand
                break
        need_mask = tc == 0
        if need_mask:
            tc = tc_cap
        nc = -(-C // tc)
        n_chunks, rem = tc // ch, 0

    # ---- batch blocking: fatter grid steps, but keep >= 2 parallel blocks ----
    tb = 1
    if nc == 1 and B > 1:
        img_bytes = _round_up(tc, sublane) * row_bytes
        tb_cap = min(B // 2,
                     max(1, block_budget // img_bytes),
                     max(1, max_chunks // max(1, n_chunks + (1 if rem else 0))))
        tb = _largest_divisor_leq(B, tb_cap)
    # TODO(synk): when B == 1 half of a v7x chip idles; a parallel spatial
    # (row-block) reduction axis with a tiny cross-block combine would fix it.

    # ---- VMEM accounting from padded footprints (double-buffered blocks) ----
    x_block = tb * _round_up(tc, sublane) * row_bytes
    out_block = tb * 8 * HWP * itemsize
    col_block = 8 * HWP * 4
    scratch = 2 * tb * _round_up(ch, 8) * HWP * 4
    finalize_tmp = 16 * HWP * 4
    needed = 2 * (x_block + out_block + col_block) + scratch + finalize_tmp
    vmem_limit = int(min(max(needed + (4 << 20), 32 << 20), 56 << 20))

    w_flat = weight.reshape(-1).astype(jnp.float32)          # (98,)
    x3 = x.reshape(B, C, HW)                                  # free view of NCHW
    lane = jnp.arange(HWP, dtype=jnp.int32)
    col = jnp.where(lane < HW, lane % W, jnp.int32(-(10 ** 6))).reshape(1, HWP)

    cost = pl.CostEstimate(
        flops=int(2 * B * C * HW + 2 * B * 2 * KSIZE * KSIZE * HW),
        transcendentals=int(B * HW),
        bytes_accessed=int(x.size * itemsize + B * HW * itemsize + 98 * 4),
    )

    kernel = functools.partial(
        _spatial_attention_kernel,
        total_c=C, tc=tc, ch=ch, n_chunks=n_chunks, rem=rem,
        need_mask=need_mask, tb=tb, H=H, W=W, HW=HW, HWP=HWP)

    out3 = pl.pallas_call(
        kernel,
        out_shape=jax.ShapeDtypeStruct((B, 1, HW), x.dtype),
        grid=(B // tb, nc),
        in_specs=[
            pl.BlockSpec(memory_space=pltpu.MemorySpace.SMEM),    # conv weights
            pl.BlockSpec((1, HWP), lambda b, c: (0, 0)),          # column ids
            pl.BlockSpec((tb, tc, HW), lambda b, c: (b, c, 0)),   # x stream
        ],
        out_specs=pl.BlockSpec((tb, 1, HW), lambda b, c: (b, 0, 0)),
        scratch_shapes=[
            pltpu.VMEM((tb, ch, HWP), jnp.float32),   # running channel sums
            pltpu.VMEM((tb, ch, HWP), jnp.float32),   # running channel maxima
        ],
        compiler_params=pltpu.CompilerParams(
            dimension_semantics=("parallel", "arbitrary"),
            vmem_limit_bytes=vmem_limit,
        ),
        cost_estimate=cost,
    )(w_flat, col, x3)

    return out3.reshape(B, 1, H, W)


def _reference(x, weight):
    """Pure-JAX reference for sanity checking."""
    avg = jnp.mean(x, axis=1, keepdims=True)
    mx = jnp.max(x, axis=1, keepdims=True)
    cat = jnp.concatenate([avg, mx], axis=1)          # (B, 2, H, W)
    out = jax.lax.conv_general_dilated(
        cat, weight, window_strides=(1, 1), padding=((PAD, PAD), (PAD, PAD)),
        dimension_numbers=("NCHW", "OIHW", "NCHW"))
    return jax.nn.sigmoid(out)


if __name__ == "__main__":
    key = jax.random.PRNGKey(0)
    kx, kw = jax.random.split(key)

    # Small shapes consistent with the module: NCHW input.
    B, C, H, W = 2, 4, 16, 16
    x = jax.random.normal(kx, (B, C, H, W), dtype=jnp.float32)

    # Deterministic conv1 weight init (shape from nn.Conv2d(2, 1, 7, bias=False)).
    fan_in = 2 * KSIZE * KSIZE
    bound = (1.0 / fan_in) ** 0.5
    weight = jax.random.uniform(
        kw, (1, 2, KSIZE, KSIZE), dtype=jnp.float32, minval=-bound, maxval=bound)

    out = spatial_attention(x, weight)
    out = jax.block_until_ready(out)

    ref = _reference(x, weight)
    assert out.shape == (B, 1, H, W), out.shape
    assert jnp.allclose(out, ref, atol=1e-5, rtol=1e-5), \
        float(jnp.max(jnp.abs(out - ref)))

    print("KERNEL_OK")
</pallas_src>

<mosaic_0001>
module attributes {stable_mosaic.version = 11 : i64} {
  func.func @_spatial_attention_kernel(%arg0: i32, %arg1: i32, %arg2: memref<98xf32, #tpu.memory_space<smem>>, %arg3: memref<1x256xi32, #tpu.memory_space<vmem>>, %arg4: memref<1x4x256xf32, #tpu.memory_space<vmem>>, %arg5: memref<1x1x256xf32, #tpu.memory_space<vmem>>, %arg6: memref<1x4x256xf32, #tpu.memory_space<vmem>>, %arg7: memref<1x4x256xf32, #tpu.memory_space<vmem>>) attributes {dimension_semantics = [#tpu.dimension_semantics<parallel>, #tpu.dimension_semantics<arbitrary>], iteration_bounds = array<i64: 2, 1>, scalar_prefetch = 0 : i64, scratch_operands = 2 : i64, tpu.core_type = #tpu.core_type<tc>, window_params = [{transform_indices = @transform_0, window_bounds = array<i64: 98>}, {pipeline_mode = #tpu.pipeline_mode<synchronous>, transform_indices = @transform_1, window_bounds = array<i64: 1, 256>}, {transform_indices = @transform_2, window_bounds = array<i64: 1, 4, 256>}, {transform_indices = @transform_3, window_bounds = array<i64: 1, 1, 256>}]} {
    %c0_i32 = arith.constant 0 : i32
    %0 = arith.cmpi eq, %arg1, %c0_i32 : i32
    %1 = arith.extui %0 : i1 to i32
    %c0_i32_0 = arith.constant 0 : i32
    %2 = arith.cmpi ne, %1, %c0_i32_0 : i32
    scf.if %2 {
      %cst = arith.constant 0.000000e+00 : f32
      %20 = vector.broadcast %cst : f32 to vector<1x4x256xf32>
      %c0_17 = arith.constant 0 : index
      %c0_18 = arith.constant 0 : index
      %c0_19 = arith.constant 0 : index
      %21 = vector.load %arg6[%c0_17, %c0_18, %c0_19] : memref<1x4x256xf32, #tpu.memory_space<vmem>>, vector<1x4x256xf32>
      tpu.vector_store %arg6[%c0_17, %c0_18, %c0_19], %20 {strides = array<i32>} : memref<1x4x256xf32, #tpu.memory_space<vmem>>, vector<1x4x256xf32>,
      %cst_20 = arith.constant 0xFF800000 : f32
      %22 = vector.broadcast %cst_20 : f32 to vector<1x4x256xf32>
      %c0_21 = arith.constant 0 : index
      %c0_22 = arith.constant 0 : index
      %c0_23 = arith.constant 0 : index
      %23 = vector.load %arg7[%c0_21, %c0_22, %c0_23] : memref<1x4x256xf32, #tpu.memory_space<vmem>>, vector<1x4x256xf32>
      tpu.vector_store %arg7[%c0_21, %c0_22, %c0_23], %22 {strides = array<i32>} : memref<1x4x256xf32, #tpu.memory_space<vmem>>, vector<1x4x256xf32>,
    } else {
    }
    %c0 = arith.constant 0 : index
    %c0_1 = arith.constant 0 : index
    %c0_2 = arith.constant 0 : index
    %3 = vector.load %arg4[%c0, %c0_1, %c0_2] : memref<1x4x256xf32, #tpu.memory_space<vmem>>, vector<1x4x256xf32>
    %4 = vector.shape_cast %3 : vector<1x4x256xf32> to vector<4x256xf32>
    %c0_3 = arith.constant 0 : index
    %c0_4 = arith.constant 0 : index
    %c0_5 = arith.constant 0 : index
    %5 = vector.load %arg6[%c0_3, %c0_4, %c0_5] : memref<1x4x256xf32, #tpu.memory_space<vmem>>, vector<1x4x256xf32>
    %6 = vector.shape_cast %5 : vector<1x4x256xf32> to vector<4x256xf32>
    %7 = arith.addf %6, %4 : vector<4x256xf32>
    %c0_6 = arith.constant 0 : index
    %c0_7 = arith.constant 0 : index
    %c0_8 = arith.constant 0 : index
    %8 = vector.load %arg6[%c0_6, %c0_7, %c0_8] : memref<1x4x256xf32, #tpu.memory_space<vmem>>, vector<1x4x256xf32>
    %9 = vector.shape_cast %8 : vector<1x4x256xf32> to vector<4x256xf32>
    %10 = vector.shape_cast %7 : vector<4x256xf32> to vector<1x4x256xf32>
    tpu.vector_store %arg6[%c0_6, %c0_7, %c0_8], %10 {strides = array<i32>} : memref<1x4x256xf32, #tpu.memory_space<vmem>>, vector<1x4x256xf32>,
    %c0_9 = arith.constant 0 : index
    %c0_10 = arith.constant 0 : index
    %c0_11 = arith.constant 0 : index
    %11 = vector.load %arg7[%c0_9, %c0_10, %c0_11] : memref<1x4x256xf32, #tpu.memory_space<vmem>>, vector<1x4x256xf32>
    %12 = vector.shape_cast %11 : vector<1x4x256xf32> to vector<4x256xf32>
    %13 = arith.maximumf %12, %4 : vector<4x256xf32>
    %c0_12 = arith.constant 0 : index
    %c0_13 = arith.constant 0 : index
    %c0_14 = arith.constant 0 : index
    %14 = vector.load %arg7[%c0_12, %c0_13, %c0_14] : memref<1x4x256xf32, #tpu.memory_space<vmem>>, vector<1x4x256xf32>
    %15 = vector.shape_cast %14 : vector<1x4x256xf32> to vector<4x256xf32>
    %16 = vector.shape_cast %13 : vector<4x256xf32> to vector<1x4x256xf32>
    tpu.vector_store %arg7[%c0_12, %c0_13, %c0_14], %16 {strides = array<i32>} : memref<1x4x256xf32, #tpu.memory_space<vmem>>, vector<1x4x256xf32>,
    %c0_i32_15 = arith.constant 0 : i32
    %17 = arith.cmpi eq, %arg1, %c0_i32_15 : i32
    %18 = arith.extui %17 : i1 to i32
    %c0_i32_16 = arith.constant 0 : i32
    %19 = arith.cmpi ne, %18, %c0_i32_16 : i32
    scf.if %19 {
      %c0_17 = arith.constant 0 : index
      %c0_18 = arith.constant 0 : index
      %20 = vector.load %arg3[%c0_17, %c0_18] : memref<1x256xi32, #tpu.memory_space<vmem>>, vector<1x256xi32>
      %21 = tpu.iota {dimensions = array<i32: 1>} : vector<1x256xi32>
      %c0_19 = arith.constant 0 : index
      %c0_20 = arith.constant 0 : index
      %c0_21 = arith.constant 0 : index
      %22 = vector.load %arg6[%c0_19, %c0_20, %c0_21] : memref<1x4x256xf32, #tpu.memory_space<vmem>>, vector<1x4x256xf32>
      %23 = vector.shape_cast %22 : vector<1x4x256xf32> to vector<4x256xf32>
      %cst = arith.constant dense<0.000000e+00> : vector<256xf32>
      %24 = vector.multi_reduction <add>, %23, %cst [0] : vector<4x256xf32> to vector<256xf32>
      %25 = vector.shape_cast %24 : vector<256xf32> to vector<1x256xf32>
      %cst_22 = arith.constant 2.500000e-01 : f32
      %26 = vector.broadcast %cst_22 : f32 to vector<1x256xf32>
      %27 = arith.mulf %25, %26 : vector<1x256xf32>
      %c0_23 = arith.constant 0 : index
      %c0_24 = arith.constant 0 : index
      %c0_25 = arith.constant 0 : index
      %28 = vector.load %arg7[%c0_23, %c0_24, %c0_25] : memref<1x4x256xf32, #tpu.memory_space<vmem>>, vector<1x4x256xf32>
      %29 = vector.shape_cast %28 : vector<1x4x256xf32> to vector<4x256xf32>
      %cst_26 = arith.constant dense<0xFF800000> : vector<256xf32>
      %30 = vector.multi_reduction <maximumf>, %29, %cst_26 [0] : vector<4x256xf32> to vector<256xf32>
      %31 = vector.shape_cast %30 : vector<256xf32> to vector<1x256xf32>
      %cst_27 = arith.constant 0.000000e+00 : f32
      %32 = vector.broadcast %cst_27 : f32 to vector<1x256xf32>
      %cst_28 = arith.constant 0.000000e+00 : f32
      %33 = vector.broadcast %cst_28 : f32 to vector<1x256xf32>
      %cst_29 = arith.constant 0.000000e+00 : f32
      %34 = vector.broadcast %cst_29 : f32 to vector<1x256xf32>
      %cst_30 = arith.constant 0.000000e+00 : f32
      %35 = vector.broadcast %cst_30 : f32 to vector<1x256xf32>
      %cst_31 = arith.constant 0.000000e+00 : f32
      %36 = vector.broadcast %cst_31 : f32 to vector<1x256xf32>
      %cst_32 = arith.constant 0.000000e+00 : f32
      %37 = vector.broadcast %cst_32 : f32 to vector<1x256xf32>
      %cst_33 = arith.constant 0.000000e+00 : f32
      %38 = vector.broadcast %cst_33 : f32 to vector<1x256xf32>
      %c3_i32 = arith.constant 3 : i32
      %39 = tpu.dynamic_rotate %27 by %c3_i32 dim 1 : vector<1x256xf32>, i32 -> vector<1x256xf32>
      %c-3_i32 = arith.constant -3 : i32
      %40 = vector.broadcast %c-3_i32 : i32 to vector<1x256xi32>
      %41 = arith.addi %20, %40 : vector<1x256xi32>
      %c0_i32_34 = arith.constant 0 : i32
      %42 = vector.broadcast %c0_i32_34 : i32 to vector<1x256xi32>
      %43 = arith.cmpi sge, %41, %42 : vector<1x256xi32>
      %c-3_i32_35 = arith.constant -3 : i32
      %44 = vector.broadcast %c-3_i32_35 : i32 to vector<1x256xi32>
      %45 = arith.addi %20, %44 : vector<1x256xi32>
      %c16_i32 = arith.constant 16 : i32
      %46 = vector.broadcast %c16_i32 : i32 to vector<1x256xi32>
      %47 = arith.cmpi slt, %45, %46 : vector<1x256xi32>
      %48 = arith.andi %43, %47 : vector<1x256xi1>
      %cst_36 = arith.constant 0.000000e+00 : f32
      %49 = vector.broadcast %cst_36 : f32 to vector<1x256xf32>
      %50 = arith.select %48, %39, %49 : vector<1x256xi1>, vector<1x256xf32>
      %c0_37 = arith.constant 0 : index
      %51 = memref.load %arg2[%c0_37] : memref<98xf32, #tpu.memory_space<smem>>
      %52 = vector.broadcast %51 : f32 to vector<1x256xf32>
      %53 = arith.mulf %52, %50 : vector<1x256xf32>
      %54 = arith.addf %32, %53 : vector<1x256xf32>
      %c7 = arith.constant 7 : index
      %55 = memref.load %arg2[%c7] : memref<98xf32, #tpu.memory_space<smem>>
      %56 = vector.broadcast %55 : f32 to vector<1x256xf32>
      %57 = arith.mulf %56, %50 : vector<1x256xf32>
      %58 = arith.addf %33, %57 : vector<1x256xf32>
      %c14 = arith.constant 14 : index
      %59 = memref.load %arg2[%c14] : memref<98xf32, #tpu.memory_space<smem>>
      %60 = vector.broadcast %59 : f32 to vector<1x256xf32>
      %61 = arith.mulf %60, %50 : vector<1x256xf32>
      %62 = arith.addf %34, %61 : vector<1x256xf32>
      %c21 = arith.constant 21 : index
      %63 = memref.load %arg2[%c21] : memref<98xf32, #tpu.memory_space<smem>>
      %64 = vector.broadcast %63 : f32 to vector<1x256xf32>
      %65 = arith.mulf %64, %50 : vector<1x256xf32>
      %66 = arith.addf %35, %65 : vector<1x256xf32>
      %c28 = arith.constant 28 : index
      %67 = memref.load %arg2[%c28] : memref<98xf32, #tpu.memory_space<smem>>
      %68 = vector.broadcast %67 : f32 to vector<1x256xf32>
      %69 = arith.mulf %68, %50 : vector<1x256xf32>
      %70 = arith.addf %36, %69 : vector<1x256xf32>
      %c35 = arith.constant 35 : index
      %71 = memref.load %arg2[%c35] : memref<98xf32, #tpu.memory_space<smem>>
      %72 = vector.broadcast %71 : f32 to vector<1x256xf32>
      %73 = arith.mulf %72, %50 : vector<1x256xf32>
      %74 = arith.addf %37, %73 : vector<1x256xf32>
      %c42 = arith.constant 42 : index
      %75 = memref.load %arg2[%c42] : memref<98xf32, #tpu.memory_space<smem>>
      %76 = vector.broadcast %75 : f32 to vector<1x256xf32>
      %77 = arith.mulf %76, %50 : vector<1x256xf32>
      %78 = arith.addf %38, %77 : vector<1x256xf32>
      %c2_i32 = arith.constant 2 : i32
      %79 = tpu.dynamic_rotate %27 by %c2_i32 dim 1 : vector<1x256xf32>, i32 -> vector<1x256xf32>
      %c-2_i32 = arith.constant -2 : i32
      %80 = vector.broadcast %c-2_i32 : i32 to vector<1x256xi32>
      %81 = arith.addi %20, %80 : vector<1x256xi32>
      %c0_i32_38 = arith.constant 0 : i32
      %82 = vector.broadcast %c0_i32_38 : i32 to vector<1x256xi32>
      %83 = arith.cmpi sge, %81, %82 : vector<1x256xi32>
      %c-2_i32_39 = arith.constant -2 : i32
      %84 = vector.broadcast %c-2_i32_39 : i32 to vector<1x256xi32>
      %85 = arith.addi %20, %84 : vector<1x256xi32>
      %c16_i32_40 = arith.constant 16 : i32
      %86 = vector.broadcast %c16_i32_40 : i32 to vector<1x256xi32>
      %87 = arith.cmpi slt, %85, %86 : vector<1x256xi32>
      %88 = arith.andi %83, %87 : vector<1x256xi1>
      %cst_41 = arith.constant 0.000000e+00 : f32
      %89 = vector.broadcast %cst_41 : f32 to vector<1x256xf32>
      %90 = arith.select %88, %79, %89 : vector<1x256xi1>, vector<1x256xf32>
      %c1 = arith.constant 1 : index
      %91 = memref.load %arg2[%c1] : memref<98xf32, #tpu.memory_space<smem>>
      %92 = vector.broadcast %91 : f32 to vector<1x256xf32>
      %93 = arith.mulf %92, %90 : vector<1x256xf32>
      %94 = arith.addf %54, %93 : vector<1x256xf32>
      %c8 = arith.constant 8 : index
      %95 = memref.load %arg2[%c8] : memref<98xf32, #tpu.memory_space<smem>>
      %96 = vector.broadcast %95 : f32 to vector<1x256xf32>
      %97 = arith.mulf %96, %90 : vector<1x256xf32>
      %98 = arith.addf %58, %97 : vector<1x256xf32>
      %c15 = arith.constant 15 : index
      %99 = memref.load %arg2[%c15] : memref<98xf32, #tpu.memory_space<smem>>
      %100 = vector.broadcast %99 : f32 to vector<1x256xf32>
      %101 = arith.mulf %100, %90 : vector<1x256xf32>
      %102 = arith.addf %62, %101 : vector<1x256xf32>
      %c22 = arith.constant 22 : index
      %103 = memref.load %arg2[%c22] : memref<98xf32, #tpu.memory_space<smem>>
      %104 = vector.broadcast %103 : f32 to vector<1x256xf32>
      %105 = arith.mulf %104, %90 : vector<1x256xf32>
      %106 = arith.addf %66, %105 : vector<1x256xf32>
      %c29 = arith.constant 29 : index
      %107 = memref.load %arg2[%c29] : memref<98xf32, #tpu.memory_space<smem>>
      %108 = vector.broadcast %107 : f32 to vector<1x256xf32>
      %109 = arith.mulf %108, %90 : vector<1x256xf32>
      %110 = arith.addf %70, %109 : vector<1x256xf32>
      %c36 = arith.constant 36 : index
      %111 = memref.load %arg2[%c36] : memref<98xf32, #tpu.memory_space<smem>>
      %112 = vector.broadcast %111 : f32 to vector<1x256xf32>
      %113 = arith.mulf %112, %90 : vector<1x256xf32>
      %114 = arith.addf %74, %113 : vector<1x256xf32>
      %c43 = arith.constant 43 : index
      %115 = memref.load %arg2[%c43] : memref<98xf32, #tpu.memory_space<smem>>
      %116 = vector.broadcast %115 : f32 to vector<1x256xf32>
      %117 = arith.mulf %116, %90 : vector<1x256xf32>
      %118 = arith.addf %78, %117 : vector<1x256xf32>
      %c1_i32 = arith.constant 1 : i32
      %119 = tpu.dynamic_rotate %27 by %c1_i32 dim 1 : vector<1x256xf32>, i32 -> vector<1x256xf32>
      %c-1_i32 = arith.constant -1 : i32
      %120 = vector.broadcast %c-1_i32 : i32 to vector<1x256xi32>
      %121 = arith.addi %20, %120 : vector<1x256xi32>
      %c0_i32_42 = arith.constant 0 : i32
      %122 = vector.broadcast %c0_i32_42 : i32 to vector<1x256xi32>
      %123 = arith.cmpi sge, %121, %122 : vector<1x256xi32>
      %c-1_i32_43 = arith.constant -1 : i32
      %124 = vector.broadcast %c-1_i32_43 : i32 to vector<1x256xi32>
      %125 = arith.addi %20, %124 : vector<1x256xi32>
      %c16_i32_44 = arith.constant 16 : i32
      %126 = vector.broadcast %c16_i32_44 : i32 to vector<1x256xi32>
      %127 = arith.cmpi slt, %125, %126 : vector<1x256xi32>
      %128 = arith.andi %123, %127 : vector<1x256xi1>
      %cst_45 = arith.constant 0.000000e+00 : f32
      %129 = vector.broadcast %cst_45 : f32 to vector<1x256xf32>
      %130 = arith.select %128, %119, %129 : vector<1x256xi1>, vector<1x256xf32>
      %c2 = arith.constant 2 : index
      %131 = memref.load %arg2[%c2] : memref<98xf32, #tpu.memory_space<smem>>
      %132 = vector.broadcast %131 : f32 to vector<1x256xf32>
      %133 = arith.mulf %132, %130 : vector<1x256xf32>
      %134 = arith.addf %94, %133 : vector<1x256xf32>
      %c9 = arith.constant 9 : index
      %135 = memref.load %arg2[%c9] : memref<98xf32, #tpu.memory_space<smem>>
      %136 = vector.broadcast %135 : f32 to vector<1x256xf32>
      %137 = arith.mulf %136, %130 : vector<1x256xf32>
      %138 = arith.addf %98, %137 : vector<1x256xf32>
      %c16 = arith.constant 16 : index
      %139 = memref.load %arg2[%c16] : memref<98xf32, #tpu.memory_space<smem>>
      %140 = vector.broadcast %139 : f32 to vector<1x256xf32>
      %141 = arith.mulf %140, %130 : vector<1x256xf32>
      %142 = arith.addf %102, %141 : vector<1x256xf32>
      %c23 = arith.constant 23 : index
      %143 = memref.load %arg2[%c23] : memref<98xf32, #tpu.memory_space<smem>>
      %144 = vector.broadcast %143 : f32 to vector<1x256xf32>
      %145 = arith.mulf %144, %130 : vector<1x256xf32>
      %146 = arith.addf %106, %145 : vector<1x256xf32>
      %c30 = arith.constant 30 : index
      %147 = memref.load %arg2[%c30] : memref<98xf32, #tpu.memory_space<smem>>
      %148 = vector.broadcast %147 : f32 to vector<1x256xf32>
      %149 = arith.mulf %148, %130 : vector<1x256xf32>
      %150 = arith.addf %110, %149 : vector<1x256xf32>
      %c37 = arith.constant 37 : index
      %151 = memref.load %arg2[%c37] : memref<98xf32, #tpu.memory_space<smem>>
      %152 = vector.broadcast %151 : f32 to vector<1x256xf32>
      %153 = arith.mulf %152, %130 : vector<1x256xf32>
      %154 = arith.addf %114, %153 : vector<1x256xf32>
      %c44 = arith.constant 44 : index
      %155 = memref.load %arg2[%c44] : memref<98xf32, #tpu.memory_space<smem>>
      %156 = vector.broadcast %155 : f32 to vector<1x256xf32>
      %157 = arith.mulf %156, %130 : vector<1x256xf32>
      %158 = arith.addf %118, %157 : vector<1x256xf32>
      %c0_i32_46 = arith.constant 0 : i32
      %159 = vector.broadcast %c0_i32_46 : i32 to vector<1x256xi32>
      %160 = arith.addi %20, %159 : vector<1x256xi32>
      %c0_i32_47 = arith.constant 0 : i32
      %161 = vector.broadcast %c0_i32_47 : i32 to vector<1x256xi32>
      %162 = arith.cmpi sge, %160, %161 : vector<1x256xi32>
      %c0_i32_48 = arith.constant 0 : i32
      %163 = vector.broadcast %c0_i32_48 : i32 to vector<1x256xi32>
      %164 = arith.addi %20, %163 : vector<1x256xi32>
      %c16_i32_49 = arith.constant 16 : i32
      %165 = vector.broadcast %c16_i32_49 : i32 to vector<1x256xi32>
      %166 = arith.cmpi slt, %164, %165 : vector<1x256xi32>
      %167 = arith.andi %162, %166 : vector<1x256xi1>
      %cst_50 = arith.constant 0.000000e+00 : f32
      %168 = vector.broadcast %cst_50 : f32 to vector<1x256xf32>
      %169 = arith.select %167, %27, %168 : vector<1x256xi1>, vector<1x256xf32>
      %c3 = arith.constant 3 : index
      %170 = memref.load %arg2[%c3] : memref<98xf32, #tpu.memory_space<smem>>
      %171 = vector.broadcast %170 : f32 to vector<1x256xf32>
      %172 = arith.mulf %171, %169 : vector<1x256xf32>
      %173 = arith.addf %134, %172 : vector<1x256xf32>
      %c10 = arith.constant 10 : index
      %174 = memref.load %arg2[%c10] : memref<98xf32, #tpu.memory_space<smem>>
      %175 = vector.broadcast %174 : f32 to vector<1x256xf32>
      %176 = arith.mulf %175, %169 : vector<1x256xf32>
      %177 = arith.addf %138, %176 : vector<1x256xf32>
      %c17 = arith.constant 17 : index
      %178 = memref.load %arg2[%c17] : memref<98xf32, #tpu.memory_space<smem>>
      %179 = vector.broadcast %178 : f32 to vector<1x256xf32>
      %180 = arith.mulf %179, %169 : vector<1x256xf32>
      %181 = arith.addf %142, %180 : vector<1x256xf32>
      %c24 = arith.constant 24 : index
      %182 = memref.load %arg2[%c24] : memref<98xf32, #tpu.memory_space<smem>>
      %183 = vector.broadcast %182 : f32 to vector<1x256xf32>
      %184 = arith.mulf %183, %169 : vector<1x256xf32>
      %185 = arith.addf %146, %184 : vector<1x256xf32>
      %c31 = arith.constant 31 : index
      %186 = memref.load %arg2[%c31] : memref<98xf32, #tpu.memory_space<smem>>
      %187 = vector.broadcast %186 : f32 to vector<1x256xf32>
      %188 = arith.mulf %187, %169 : vector<1x256xf32>
      %189 = arith.addf %150, %188 : vector<1x256xf32>
      %c38 = arith.constant 38 : index
      %190 = memref.load %arg2[%c38] : memref<98xf32, #tpu.memory_space<smem>>
      %191 = vector.broadcast %190 : f32 to vector<1x256xf32>
      %192 = arith.mulf %191, %169 : vector<1x256xf32>
      %193 = arith.addf %154, %192 : vector<1x256xf32>
      %c45 = arith.constant 45 : index
      %194 = memref.load %arg2[%c45] : memref<98xf32, #tpu.memory_space<smem>>
      %195 = vector.broadcast %194 : f32 to vector<1x256xf32>
      %196 = arith.mulf %195, %169 : vector<1x256xf32>
      %197 = arith.addf %158, %196 : vector<1x256xf32>
      %c255_i32 = arith.constant 255 : i32
      %198 = tpu.dynamic_rotate %27 by %c255_i32 dim 1 : vector<1x256xf32>, i32 -> vector<1x256xf32>
      %c1_i32_51 = arith.constant 1 : i32
      %199 = vector.broadcast %c1_i32_51 : i32 to vector<1x256xi32>
      %200 = arith.addi %20, %199 : vector<1x256xi32>
      %c0_i32_52 = arith.constant 0 : i32
      %201 = vector.broadcast %c0_i32_52 : i32 to vector<1x256xi32>
      %202 = arith.cmpi sge, %200, %201 : vector<1x256xi32>
      %c1_i32_53 = arith.constant 1 : i32
      %203 = vector.broadcast %c1_i32_53 : i32 to vector<1x256xi32>
      %204 = arith.addi %20, %203 : vector<1x256xi32>
      %c16_i32_54 = arith.constant 16 : i32
      %205 = vector.broadcast %c16_i32_54 : i32 to vector<1x256xi32>
      %206 = arith.cmpi slt, %204, %205 : vector<1x256xi32>
      %207 = arith.andi %202, %206 : vector<1x256xi1>
      %cst_55 = arith.constant 0.000000e+00 : f32
      %208 = vector.broadcast %cst_55 : f32 to vector<1x256xf32>
      %209 = arith.select %207, %198, %208 : vector<1x256xi1>, vector<1x256xf32>
      %c4 = arith.constant 4 : index
      %210 = memref.load %arg2[%c4] : memref<98xf32, #tpu.memory_space<smem>>
      %211 = vector.broadcast %210 : f32 to vector<1x256xf32>
      %212 = arith.mulf %211, %209 : vector<1x256xf32>
      %213 = arith.addf %173, %212 : vector<1x256xf32>
      %c11 = arith.constant 11 : index
      %214 = memref.load %arg2[%c11] : memref<98xf32, #tpu.memory_space<smem>>
      %215 = vector.broadcast %214 : f32 to vector<1x256xf32>
      %216 = arith.mulf %215, %209 : vector<1x256xf32>
      %217 = arith.addf %177, %216 : vector<1x256xf32>
      %c18 = arith.constant 18 : index
      %218 = memref.load %arg2[%c18] : memref<98xf32, #tpu.memory_space<smem>>
      %219 = vector.broadcast %218 : f32 to vector<1x256xf32>
      %220 = arith.mulf %219, %209 : vector<1x256xf32>
      %221 = arith.addf %181, %220 : vector<1x256xf32>
      %c25 = arith.constant 25 : index
      %222 = memref.load %arg2[%c25] : memref<98xf32, #tpu.memory_space<smem>>
      %223 = vector.broadcast %222 : f32 to vector<1x256xf32>
      %224 = arith.mulf %223, %209 : vector<1x256xf32>
      %225 = arith.addf %185, %224 : vector<1x256xf32>
      %c32 = arith.constant 32 : index
      %226 = memref.load %arg2[%c32] : memref<98xf32, #tpu.memory_space<smem>>
      %227 = vector.broadcast %226 : f32 to vector<1x256xf32>
      %228 = arith.mulf %227, %209 : vector<1x256xf32>
      %229 = arith.addf %189, %228 : vector<1x256xf32>
      %c39 = arith.constant 39 : index
      %230 = memref.load %arg2[%c39] : memref<98xf32, #tpu.memory_space<smem>>
      %231 = vector.broadcast %230 : f32 to vector<1x256xf32>
      %232 = arith.mulf %231, %209 : vector<1x256xf32>
      %233 = arith.addf %193, %232 : vector<1x256xf32>
      %c46 = arith.constant 46 : index
      %234 = memref.load %arg2[%c46] : memref<98xf32, #tpu.memory_space<smem>>
      %235 = vector.broadcast %234 : f32 to vector<1x256xf32>
      %236 = arith.mulf %235, %209 : vector<1x256xf32>
      %237 = arith.addf %197, %236 : vector<1x256xf32>
      %c254_i32 = arith.constant 254 : i32
      %238 = tpu.dynamic_rotate %27 by %c254_i32 dim 1 : vector<1x256xf32>, i32 -> vector<1x256xf32>
      %c2_i32_56 = arith.constant 2 : i32
      %239 = vector.broadcast %c2_i32_56 : i32 to vector<1x256xi32>
      %240 = arith.addi %20, %239 : vector<1x256xi32>
      %c0_i32_57 = arith.constant 0 : i32
      %241 = vector.broadcast %c0_i32_57 : i32 to vector<1x256xi32>
      %242 = arith.cmpi sge, %240, %241 : vector<1x256xi32>
      %c2_i32_58 = arith.constant 2 : i32
      %243 = vector.broadcast %c2_i32_58 : i32 to vector<1x256xi32>
      %244 = arith.addi %20, %243 : vector<1x256xi32>
      %c16_i32_59 = arith.constant 16 : i32
      %245 = vector.broadcast %c16_i32_59 : i32 to vector<1x256xi32>
      %246 = arith.cmpi slt, %244, %245 : vector<1x256xi32>
      %247 = arith.andi %242, %246 : vector<1x256xi1>
      %cst_60 = arith.constant 0.000000e+00 : f32
      %248 = vector.broadcast %cst_60 : f32 to vector<1x256xf32>
      %249 = arith.select %247, %238, %248 : vector<1x256xi1>, vector<1x256xf32>
      %c5 = arith.constant 5 : index
      %250 = memref.load %arg2[%c5] : memref<98xf32, #tpu.memory_space<smem>>
      %251 = vector.broadcast %250 : f32 to vector<1x256xf32>
      %252 = arith.mulf %251, %249 : vector<1x256xf32>
      %253 = arith.addf %213, %252 : vector<1x256xf32>
      %c12 = arith.constant 12 : index
      %254 = memref.load %arg2[%c12] : memref<98xf32, #tpu.memory_space<smem>>
      %255 = vector.broadcast %254 : f32 to vector<1x256xf32>
      %256 = arith.mulf %255, %249 : vector<1x256xf32>
      %257 = arith.addf %217, %256 : vector<1x256xf32>
      %c19 = arith.constant 19 : index
      %258 = memref.load %arg2[%c19] : memref<98xf32, #tpu.memory_space<smem>>
      %259 = vector.broadcast %258 : f32 to vector<1x256xf32>
      %260 = arith.mulf %259, %249 : vector<1x256xf32>
      %261 = arith.addf %221, %260 : vector<1x256xf32>
      %c26 = arith.constant 26 : index
      %262 = memref.load %arg2[%c26] : memref<98xf32, #tpu.memory_space<smem>>
      %263 = vector.broadcast %262 : f32 to vector<1x256xf32>
      %264 = arith.mulf %263, %249 : vector<1x256xf32>
      %265 = arith.addf %225, %264 : vector<1x256xf32>
      %c33 = arith.constant 33 : index
      %266 = memref.load %arg2[%c33] : memref<98xf32, #tpu.memory_space<smem>>
      %267 = vector.broadcast %266 : f32 to vector<1x256xf32>
      %268 = arith.mulf %267, %249 : vector<1x256xf32>
      %269 = arith.addf %229, %268 : vector<1x256xf32>
      %c40 = arith.constant 40 : index
      %270 = memref.load %arg2[%c40] : memref<98xf32, #tpu.memory_space<smem>>
      %271 = vector.broadcast %270 : f32 to vector<1x256xf32>
      %272 = arith.mulf %271, %249 : vector<1x256xf32>
      %273 = arith.addf %233, %272 : vector<1x256xf32>
      %c47 = arith.constant 47 : index
      %274 = memref.load %arg2[%c47] : memref<98xf32, #tpu.memory_space<smem>>
      %275 = vector.broadcast %274 : f32 to vector<1x256xf32>
      %276 = arith.mulf %275, %249 : vector<1x256xf32>
      %277 = arith.addf %237, %276 : vector<1x256xf32>
      %c253_i32 = arith.constant 253 : i32
      %278 = tpu.dynamic_rotate %27 by %c253_i32 dim 1 : vector<1x256xf32>, i32 -> vector<1x256xf32>
      %c3_i32_61 = arith.constant 3 : i32
      %279 = vector.broadcast %c3_i32_61 : i32 to vector<1x256xi32>
      %280 = arith.addi %20, %279 : vector<1x256xi32>
      %c0_i32_62 = arith.constant 0 : i32
      %281 = vector.broadcast %c0_i32_62 : i32 to vector<1x256xi32>
      %282 = arith.cmpi sge, %280, %281 : vector<1x256xi32>
      %c3_i32_63 = arith.constant 3 : i32
      %283 = vector.broadcast %c3_i32_63 : i32 to vector<1x256xi32>
      %284 = arith.addi %20, %283 : vector<1x256xi32>
      %c16_i32_64 = arith.constant 16 : i32
      %285 = vector.broadcast %c16_i32_64 : i32 to vector<1x256xi32>
      %286 = arith.cmpi slt, %284, %285 : vector<1x256xi32>
      %287 = arith.andi %282, %286 : vector<1x256xi1>
      %cst_65 = arith.constant 0.000000e+00 : f32
      %288 = vector.broadcast %cst_65 : f32 to vector<1x256xf32>
      %289 = arith.select %287, %278, %288 : vector<1x256xi1>, vector<1x256xf32>
      %c6 = arith.constant 6 : index
      %290 = memref.load %arg2[%c6] : memref<98xf32, #tpu.memory_space<smem>>
      %291 = vector.broadcast %290 : f32 to vector<1x256xf32>
      %292 = arith.mulf %291, %289 : vector<1x256xf32>
      %293 = arith.addf %253, %292 : vector<1x256xf32>
      %c13 = arith.constant 13 : index
      %294 = memref.load %arg2[%c13] : memref<98xf32, #tpu.memory_space<smem>>
      %295 = vector.broadcast %294 : f32 to vector<1x256xf32>
      %296 = arith.mulf %295, %289 : vector<1x256xf32>
      %297 = arith.addf %257, %296 : vector<1x256xf32>
      %c20 = arith.constant 20 : index
      %298 = memref.load %arg2[%c20] : memref<98xf32, #tpu.memory_space<smem>>
      %299 = vector.broadcast %298 : f32 to vector<1x256xf32>
      %300 = arith.mulf %299, %289 : vector<1x256xf32>
      %301 = arith.addf %261, %300 : vector<1x256xf32>
      %c27 = arith.constant 27 : index
      %302 = memref.load %arg2[%c27] : memref<98xf32, #tpu.memory_space<smem>>
      %303 = vector.broadcast %302 : f32 to vector<1x256xf32>
      %304 = arith.mulf %303, %289 : vector<1x256xf32>
      %305 = arith.addf %265, %304 : vector<1x256xf32>
      %c34 = arith.constant 34 : index
      %306 = memref.load %arg2[%c34] : memref<98xf32, #tpu.memory_space<smem>>
      %307 = vector.broadcast %306 : f32 to vector<1x256xf32>
      %308 = arith.mulf %307, %289 : vector<1x256xf32>
      %309 = arith.addf %269, %308 : vector<1x256xf32>
      %c41 = arith.constant 41 : index
      %310 = memref.load %arg2[%c41] : memref<98xf32, #tpu.memory_space<smem>>
      %311 = vector.broadcast %310 : f32 to vector<1x256xf32>
      %312 = arith.mulf %311, %289 : vector<1x256xf32>
      %313 = arith.addf %273, %312 : vector<1x256xf32>
      %c48 = arith.constant 48 : index
      %314 = memref.load %arg2[%c48] : memref<98xf32, #tpu.memory_space<smem>>
      %315 = vector.broadcast %314 : f32 to vector<1x256xf32>
      %316 = arith.mulf %315, %289 : vector<1x256xf32>
      %317 = arith.addf %277, %316 : vector<1x256xf32>
      %c3_i32_66 = arith.constant 3 : i32
      %318 = tpu.dynamic_rotate %31 by %c3_i32_66 dim 1 : vector<1x256xf32>, i32 -> vector<1x256xf32>
      %c-3_i32_67 = arith.constant -3 : i32
      %319 = vector.broadcast %c-3_i32_67 : i32 to vector<1x256xi32>
      %320 = arith.addi %20, %319 : vector<1x256xi32>
      %c0_i32_68 = arith.constant 0 : i32
      %321 = vector.broadcast %c0_i32_68 : i32 to vector<1x256xi32>
      %322 = arith.cmpi sge, %320, %321 : vector<1x256xi32>
      %c-3_i32_69 = arith.constant -3 : i32
      %323 = vector.broadcast %c-3_i32_69 : i32 to vector<1x256xi32>
      %324 = arith.addi %20, %323 : vector<1x256xi32>
      %c16_i32_70 = arith.constant 16 : i32
      %325 = vector.broadcast %c16_i32_70 : i32 to vector<1x256xi32>
      %326 = arith.cmpi slt, %324, %325 : vector<1x256xi32>
      %327 = arith.andi %322, %326 : vector<1x256xi1>
      %cst_71 = arith.constant 0.000000e+00 : f32
      %328 = vector.broadcast %cst_71 : f32 to vector<1x256xf32>
      %329 = arith.select %327, %318, %328 : vector<1x256xi1>, vector<1x256xf32>
      %c49 = arith.constant 49 : index
      %330 = memref.load %arg2[%c49] : memref<98xf32, #tpu.memory_space<smem>>
      %331 = vector.broadcast %330 : f32 to vector<1x256xf32>
      %332 = arith.mulf %331, %329 : vector<1x256xf32>
      %333 = arith.addf %293, %332 : vector<1x256xf32>
      %c56 = arith.constant 56 : index
      %334 = memref.load %arg2[%c56] : memref<98xf32, #tpu.memory_space<smem>>
      %335 = vector.broadcast %334 : f32 to vector<1x256xf32>
      %336 = arith.mulf %335, %329 : vector<1x256xf32>
      %337 = arith.addf %297, %336 : vector<1x256xf32>
      %c63 = arith.constant 63 : index
      %338 = memref.load %arg2[%c63] : memref<98xf32, #tpu.memory_space<smem>>
      %339 = vector.broadcast %338 : f32 to vector<1x256xf32>
      %340 = arith.mulf %339, %329 : vector<1x256xf32>
      %341 = arith.addf %301, %340 : vector<1x256xf32>
      %c70 = arith.constant 70 : index
      %342 = memref.load %arg2[%c70] : memref<98xf32, #tpu.memory_space<smem>>
      %343 = vector.broadcast %342 : f32 to vector<1x256xf32>
      %344 = arith.mulf %343, %329 : vector<1x256xf32>
      %345 = arith.addf %305, %344 : vector<1x256xf32>
      %c77 = arith.constant 77 : index
      %346 = memref.load %arg2[%c77] : memref<98xf32, #tpu.memory_space<smem>>
      %347 = vector.broadcast %346 : f32 to vector<1x256xf32>
      %348 = arith.mulf %347, %329 : vector<1x256xf32>
      %349 = arith.addf %309, %348 : vector<1x256xf32>
      %c84 = arith.constant 84 : index
      %350 = memref.load %arg2[%c84] : memref<98xf32, #tpu.memory_space<smem>>
      %351 = vector.broadcast %350 : f32 to vector<1x256xf32>
      %352 = arith.mulf %351, %329 : vector<1x256xf32>
      %353 = arith.addf %313, %352 : vector<1x256xf32>
      %c91 = arith.constant 91 : index
      %354 = memref.load %arg2[%c91] : memref<98xf32, #tpu.memory_space<smem>>
      %355 = vector.broadcast %354 : f32 to vector<1x256xf32>
      %356 = arith.mulf %355, %329 : vector<1x256xf32>
      %357 = arith.addf %317, %356 : vector<1x256xf32>
      %c2_i32_72 = arith.constant 2 : i32
      %358 = tpu.dynamic_rotate %31 by %c2_i32_72 dim 1 : vector<1x256xf32>, i32 -> vector<1x256xf32>
      %c-2_i32_73 = arith.constant -2 : i32
      %359 = vector.broadcast %c-2_i32_73 : i32 to vector<1x256xi32>
      %360 = arith.addi %20, %359 : vector<1x256xi32>
      %c0_i32_74 = arith.constant 0 : i32
      %361 = vector.broadcast %c0_i32_74 : i32 to vector<1x256xi32>
      %362 = arith.cmpi sge, %360, %361 : vector<1x256xi32>
      %c-2_i32_75 = arith.constant -2 : i32
      %363 = vector.broadcast %c-2_i32_75 : i32 to vector<1x256xi32>
      %364 = arith.addi %20, %363 : vector<1x256xi32>
      %c16_i32_76 = arith.constant 16 : i32
      %365 = vector.broadcast %c16_i32_76 : i32 to vector<1x256xi32>
      %366 = arith.cmpi slt, %364, %365 : vector<1x256xi32>
      %367 = arith.andi %362, %366 : vector<1x256xi1>
      %cst_77 = arith.constant 0.000000e+00 : f32
      %368 = vector.broadcast %cst_77 : f32 to vector<1x256xf32>
      %369 = arith.select %367, %358, %368 : vector<1x256xi1>, vector<1x256xf32>
      %c50 = arith.constant 50 : index
      %370 = memref.load %arg2[%c50] : memref<98xf32, #tpu.memory_space<smem>>
      %371 = vector.broadcast %370 : f32 to vector<1x256xf32>
      %372 = arith.mulf %371, %369 : vector<1x256xf32>
      %373 = arith.addf %333, %372 : vector<1x256xf32>
      %c57 = arith.constant 57 : index
      %374 = memref.load %arg2[%c57] : memref<98xf32, #tpu.memory_space<smem>>
      %375 = vector.broadcast %374 : f32 to vector<1x256xf32>
      %376 = arith.mulf %375, %369 : vector<1x256xf32>
      %377 = arith.addf %337, %376 : vector<1x256xf32>
      %c64 = arith.constant 64 : index
      %378 = memref.load %arg2[%c64] : memref<98xf32, #tpu.memory_space<smem>>
      %379 = vector.broadcast %378 : f32 to vector<1x256xf32>
      %380 = arith.mulf %379, %369 : vector<1x256xf32>
      %381 = arith.addf %341, %380 : vector<1x256xf32>
      %c71 = arith.constant 71 : index
      %382 = memref.load %arg2[%c71] : memref<98xf32, #tpu.memory_space<smem>>
      %383 = vector.broadcast %382 : f32 to vector<1x256xf32>
      %384 = arith.mulf %383, %369 : vector<1x256xf32>
      %385 = arith.addf %345, %384 : vector<1x256xf32>
      %c78 = arith.constant 78 : index
      %386 = memref.load %arg2[%c78] : memref<98xf32, #tpu.memory_space<smem>>
      %387 = vector.broadcast %386 : f32 to vector<1x256xf32>
      %388 = arith.mulf %387, %369 : vector<1x256xf32>
      %389 = arith.addf %349, %388 : vector<1x256xf32>
      %c85 = arith.constant 85 : index
      %390 = memref.load %arg2[%c85] : memref<98xf32, #tpu.memory_space<smem>>
      %391 = vector.broadcast %390 : f32 to vector<1x256xf32>
      %392 = arith.mulf %391, %369 : vector<1x256xf32>
      %393 = arith.addf %353, %392 : vector<1x256xf32>
      %c92 = arith.constant 92 : index
      %394 = memref.load %arg2[%c92] : memref<98xf32, #tpu.memory_space<smem>>
      %395 = vector.broadcast %394 : f32 to vector<1x256xf32>
      %396 = arith.mulf %395, %369 : vector<1x256xf32>
      %397 = arith.addf %357, %396 : vector<1x256xf32>
      %c1_i32_78 = arith.constant 1 : i32
      %398 = tpu.dynamic_rotate %31 by %c1_i32_78 dim 1 : vector<1x256xf32>, i32 -> vector<1x256xf32>
      %c-1_i32_79 = arith.constant -1 : i32
      %399 = vector.broadcast %c-1_i32_79 : i32 to vector<1x256xi32>
      %400 = arith.addi %20, %399 : vector<1x256xi32>
      %c0_i32_80 = arith.constant 0 : i32
      %401 = vector.broadcast %c0_i32_80 : i32 to vector<1x256xi32>
      %402 = arith.cmpi sge, %400, %401 : vector<1x256xi32>
      %c-1_i32_81 = arith.constant -1 : i32
      %403 = vector.broadcast %c-1_i32_81 : i32 to vector<1x256xi32>
      %404 = arith.addi %20, %403 : vector<1x256xi32>
      %c16_i32_82 = arith.constant 16 : i32
      %405 = vector.broadcast %c16_i32_82 : i32 to vector<1x256xi32>
      %406 = arith.cmpi slt, %404, %405 : vector<1x256xi32>
      %407 = arith.andi %402, %406 : vector<1x256xi1>
      %cst_83 = arith.constant 0.000000e+00 : f32
      %408 = vector.broadcast %cst_83 : f32 to vector<1x256xf32>
      %409 = arith.select %407, %398, %408 : vector<1x256xi1>, vector<1x256xf32>
      %c51 = arith.constant 51 : index
      %410 = memref.load %arg2[%c51] : memref<98xf32, #tpu.memory_space<smem>>
      %411 = vector.broadcast %410 : f32 to vector<1x256xf32>
      %412 = arith.mulf %411, %409 : vector<1x256xf32>
      %413 = arith.addf %373, %412 : vector<1x256xf32>
      %c58 = arith.constant 58 : index
      %414 = memref.load %arg2[%c58] : memref<98xf32, #tpu.memory_space<smem>>
      %415 = vector.broadcast %414 : f32 to vector<1x256xf32>
      %416 = arith.mulf %415, %409 : vector<1x256xf32>
      %417 = arith.addf %377, %416 : vector<1x256xf32>
      %c65 = arith.constant 65 : index
      %418 = memref.load %arg2[%c65] : memref<98xf32, #tpu.memory_space<smem>>
      %419 = vector.broadcast %418 : f32 to vector<1x256xf32>
      %420 = arith.mulf %419, %409 : vector<1x256xf32>
      %421 = arith.addf %381, %420 : vector<1x256xf32>
      %c72 = arith.constant 72 : index
      %422 = memref.load %arg2[%c72] : memref<98xf32, #tpu.memory_space<smem>>
      %423 = vector.broadcast %422 : f32 to vector<1x256xf32>
      %424 = arith.mulf %423, %409 : vector<1x256xf32>
      %425 = arith.addf %385, %424 : vector<1x256xf32>
      %c79 = arith.constant 79 : index
      %426 = memref.load %arg2[%c79] : memref<98xf32, #tpu.memory_space<smem>>
      %427 = vector.broadcast %426 : f32 to vector<1x256xf32>
      %428 = arith.mulf %427, %409 : vector<1x256xf32>
      %429 = arith.addf %389, %428 : vector<1x256xf32>
      %c86 = arith.constant 86 : index
      %430 = memref.load %arg2[%c86] : memref<98xf32, #tpu.memory_space<smem>>
      %431 = vector.broadcast %430 : f32 to vector<1x256xf32>
      %432 = arith.mulf %431, %409 : vector<1x256xf32>
      %433 = arith.addf %393, %432 : vector<1x256xf32>
      %c93 = arith.constant 93 : index
      %434 = memref.load %arg2[%c93] : memref<98xf32, #tpu.memory_space<smem>>
      %435 = vector.broadcast %434 : f32 to vector<1x256xf32>
      %436 = arith.mulf %435, %409 : vector<1x256xf32>
      %437 = arith.addf %397, %436 : vector<1x256xf32>
      %c0_i32_84 = arith.constant 0 : i32
      %438 = vector.broadcast %c0_i32_84 : i32 to vector<1x256xi32>
      %439 = arith.addi %20, %438 : vector<1x256xi32>
      %c0_i32_85 = arith.constant 0 : i32
      %440 = vector.broadcast %c0_i32_85 : i32 to vector<1x256xi32>
      %441 = arith.cmpi sge, %439, %440 : vector<1x256xi32>
      %c0_i32_86 = arith.constant 0 : i32
      %442 = vector.broadcast %c0_i32_86 : i32 to vector<1x256xi32>
      %443 = arith.addi %20, %442 : vector<1x256xi32>
      %c16_i32_87 = arith.constant 16 : i32
      %444 = vector.broadcast %c16_i32_87 : i32 to vector<1x256xi32>
      %445 = arith.cmpi slt, %443, %444 : vector<1x256xi32>
      %446 = arith.andi %441, %445 : vector<1x256xi1>
      %cst_88 = arith.constant 0.000000e+00 : f32
      %447 = vector.broadcast %cst_88 : f32 to vector<1x256xf32>
      %448 = arith.select %446, %31, %447 : vector<1x256xi1>, vector<1x256xf32>
      %c52 = arith.constant 52 : index
      %449 = memref.load %arg2[%c52] : memref<98xf32, #tpu.memory_space<smem>>
      %450 = vector.broadcast %449 : f32 to vector<1x256xf32>
      %451 = arith.mulf %450, %448 : vector<1x256xf32>
      %452 = arith.addf %413, %451 : vector<1x256xf32>
      %c59 = arith.constant 59 : index
      %453 = memref.load %arg2[%c59] : memref<98xf32, #tpu.memory_space<smem>>
      %454 = vector.broadcast %453 : f32 to vector<1x256xf32>
      %455 = arith.mulf %454, %448 : vector<1x256xf32>
      %456 = arith.addf %417, %455 : vector<1x256xf32>
      %c66 = arith.constant 66 : index
      %457 = memref.load %arg2[%c66] : memref<98xf32, #tpu.memory_space<smem>>
      %458 = vector.broadcast %457 : f32 to vector<1x256xf32>
      %459 = arith.mulf %458, %448 : vector<1x256xf32>
      %460 = arith.addf %421, %459 : vector<1x256xf32>
      %c73 = arith.constant 73 : index
      %461 = memref.load %arg2[%c73] : memref<98xf32, #tpu.memory_space<smem>>
      %462 = vector.broadcast %461 : f32 to vector<1x256xf32>
      %463 = arith.mulf %462, %448 : vector<1x256xf32>
      %464 = arith.addf %425, %463 : vector<1x256xf32>
      %c80 = arith.constant 80 : index
      %465 = memref.load %arg2[%c80] : memref<98xf32, #tpu.memory_space<smem>>
      %466 = vector.broadcast %465 : f32 to vector<1x256xf32>
      %467 = arith.mulf %466, %448 : vector<1x256xf32>
      %468 = arith.addf %429, %467 : vector<1x256xf32>
      %c87 = arith.constant 87 : index
      %469 = memref.load %arg2[%c87] : memref<98xf32, #tpu.memory_space<smem>>
      %470 = vector.broadcast %469 : f32 to vector<1x256xf32>
      %471 = arith.mulf %470, %448 : vector<1x256xf32>
      %472 = arith.addf %433, %471 : vector<1x256xf32>
      %c94 = arith.constant 94 : index
      %473 = memref.load %arg2[%c94] : memref<98xf32, #tpu.memory_space<smem>>
      %474 = vector.broadcast %473 : f32 to vector<1x256xf32>
      %475 = arith.mulf %474, %448 : vector<1x256xf32>
      %476 = arith.addf %437, %475 : vector<1x256xf32>
      %c255_i32_89 = arith.constant 255 : i32
      %477 = tpu.dynamic_rotate %31 by %c255_i32_89 dim 1 : vector<1x256xf32>, i32 -> vector<1x256xf32>
      %c1_i32_90 = arith.constant 1 : i32
      %478 = vector.broadcast %c1_i32_90 : i32 to vector<1x256xi32>
      %479 = arith.addi %20, %478 : vector<1x256xi32>
      %c0_i32_91 = arith.constant 0 : i32
      %480 = vector.broadcast %c0_i32_91 : i32 to vector<1x256xi32>
      %481 = arith.cmpi sge, %479, %480 : vector<1x256xi32>
      %c1_i32_92 = arith.constant 1 : i32
      %482 = vector.broadcast %c1_i32_92 : i32 to vector<1x256xi32>
      %483 = arith.addi %20, %482 : vector<1x256xi32>
      %c16_i32_93 = arith.constant 16 : i32
      %484 = vector.broadcast %c16_i32_93 : i32 to vector<1x256xi32>
      %485 = arith.cmpi slt, %483, %484 : vector<1x256xi32>
      %486 = arith.andi %481, %485 : vector<1x256xi1>
      %cst_94 = arith.constant 0.000000e+00 : f32
      %487 = vector.broadcast %cst_94 : f32 to vector<1x256xf32>
      %488 = arith.select %486, %477, %487 : vector<1x256xi1>, vector<1x256xf32>
      %c53 = arith.constant 53 : index
      %489 = memref.load %arg2[%c53] : memref<98xf32, #tpu.memory_space<smem>>
      %490 = vector.broadcast %489 : f32 to vector<1x256xf32>
      %491 = arith.mulf %490, %488 : vector<1x256xf32>
      %492 = arith.addf %452, %491 : vector<1x256xf32>
      %c60 = arith.constant 60 : index
      %493 = memref.load %arg2[%c60] : memref<98xf32, #tpu.memory_space<smem>>
      %494 = vector.broadcast %493 : f32 to vector<1x256xf32>
      %495 = arith.mulf %494, %488 : vector<1x256xf32>
      %496 = arith.addf %456, %495 : vector<1x256xf32>
      %c67 = arith.constant 67 : index
      %497 = memref.load %arg2[%c67] : memref<98xf32, #tpu.memory_space<smem>>
      %498 = vector.broadcast %497 : f32 to vector<1x256xf32>
      %499 = arith.mulf %498, %488 : vector<1x256xf32>
      %500 = arith.addf %460, %499 : vector<1x256xf32>
      %c74 = arith.constant 74 : index
      %501 = memref.load %arg2[%c74] : memref<98xf32, #tpu.memory_space<smem>>
      %502 = vector.broadcast %501 : f32 to vector<1x256xf32>
      %503 = arith.mulf %502, %488 : vector<1x256xf32>
      %504 = arith.addf %464, %503 : vector<1x256xf32>
      %c81 = arith.constant 81 : index
      %505 = memref.load %arg2[%c81] : memref<98xf32, #tpu.memory_space<smem>>
      %506 = vector.broadcast %505 : f32 to vector<1x256xf32>
      %507 = arith.mulf %506, %488 : vector<1x256xf32>
      %508 = arith.addf %468, %507 : vector<1x256xf32>
      %c88 = arith.constant 88 : index
      %509 = memref.load %arg2[%c88] : memref<98xf32, #tpu.memory_space<smem>>
      %510 = vector.broadcast %509 : f32 to vector<1x256xf32>
      %511 = arith.mulf %510, %488 : vector<1x256xf32>
      %512 = arith.addf %472, %511 : vector<1x256xf32>
      %c95 = arith.constant 95 : index
      %513 = memref.load %arg2[%c95] : memref<98xf32, #tpu.memory_space<smem>>
      %514 = vector.broadcast %513 : f32 to vector<1x256xf32>
      %515 = arith.mulf %514, %488 : vector<1x256xf32>
      %516 = arith.addf %476, %515 : vector<1x256xf32>
      %c254_i32_95 = arith.constant 254 : i32
      %517 = tpu.dynamic_rotate %31 by %c254_i32_95 dim 1 : vector<1x256xf32>, i32 -> vector<1x256xf32>
      %c2_i32_96 = arith.constant 2 : i32
      %518 = vector.broadcast %c2_i32_96 : i32 to vector<1x256xi32>
      %519 = arith.addi %20, %518 : vector<1x256xi32>
      %c0_i32_97 = arith.constant 0 : i32
      %520 = vector.broadcast %c0_i32_97 : i32 to vector<1x256xi32>
      %521 = arith.cmpi sge, %519, %520 : vector<1x256xi32>
      %c2_i32_98 = arith.constant 2 : i32
      %522 = vector.broadcast %c2_i32_98 : i32 to vector<1x256xi32>
      %523 = arith.addi %20, %522 : vector<1x256xi32>
      %c16_i32_99 = arith.constant 16 : i32
      %524 = vector.broadcast %c16_i32_99 : i32 to vector<1x256xi32>
      %525 = arith.cmpi slt, %523, %524 : vector<1x256xi32>
      %526 = arith.andi %521, %525 : vector<1x256xi1>
      %cst_100 = arith.constant 0.000000e+00 : f32
      %527 = vector.broadcast %cst_100 : f32 to vector<1x256xf32>
      %528 = arith.select %526, %517, %527 : vector<1x256xi1>, vector<1x256xf32>
      %c54 = arith.constant 54 : index
      %529 = memref.load %arg2[%c54] : memref<98xf32, #tpu.memory_space<smem>>
      %530 = vector.broadcast %529 : f32 to vector<1x256xf32>
      %531 = arith.mulf %530, %528 : vector<1x256xf32>
      %532 = arith.addf %492, %531 : vector<1x256xf32>
      %c61 = arith.constant 61 : index
      %533 = memref.load %arg2[%c61] : memref<98xf32, #tpu.memory_space<smem>>
      %534 = vector.broadcast %533 : f32 to vector<1x256xf32>
      %535 = arith.mulf %534, %528 : vector<1x256xf32>
      %536 = arith.addf %496, %535 : vector<1x256xf32>
      %c68 = arith.constant 68 : index
      %537 = memref.load %arg2[%c68] : memref<98xf32, #tpu.memory_space<smem>>
      %538 = vector.broadcast %537 : f32 to vector<1x256xf32>
      %539 = arith.mulf %538, %528 : vector<1x256xf32>
      %540 = arith.addf %500, %539 : vector<1x256xf32>
      %c75 = arith.constant 75 : index
      %541 = memref.load %arg2[%c75] : memref<98xf32, #tpu.memory_space<smem>>
      %542 = vector.broadcast %541 : f32 to vector<1x256xf32>
      %543 = arith.mulf %542, %528 : vector<1x256xf32>
      %544 = arith.addf %504, %543 : vector<1x256xf32>
      %c82 = arith.constant 82 : index
      %545 = memref.load %arg2[%c82] : memref<98xf32, #tpu.memory_space<smem>>
      %546 = vector.broadcast %545 : f32 to vector<1x256xf32>
      %547 = arith.mulf %546, %528 : vector<1x256xf32>
      %548 = arith.addf %508, %547 : vector<1x256xf32>
      %c89 = arith.constant 89 : index
      %549 = memref.load %arg2[%c89] : memref<98xf32, #tpu.memory_space<smem>>
      %550 = vector.broadcast %549 : f32 to vector<1x256xf32>
      %551 = arith.mulf %550, %528 : vector<1x256xf32>
      %552 = arith.addf %512, %551 : vector<1x256xf32>
      %c96 = arith.constant 96 : index
      %553 = memref.load %arg2[%c96] : memref<98xf32, #tpu.memory_space<smem>>
      %554 = vector.broadcast %553 : f32 to vector<1x256xf32>
      %555 = arith.mulf %554, %528 : vector<1x256xf32>
      %556 = arith.addf %516, %555 : vector<1x256xf32>
      %c253_i32_101 = arith.constant 253 : i32
      %557 = tpu.dynamic_rotate %31 by %c253_i32_101 dim 1 : vector<1x256xf32>, i32 -> vector<1x256xf32>
      %c3_i32_102 = arith.constant 3 : i32
      %558 = vector.broadcast %c3_i32_102 : i32 to vector<1x256xi32>
      %559 = arith.addi %20, %558 : vector<1x256xi32>
      %c0_i32_103 = arith.constant 0 : i32
      %560 = vector.broadcast %c0_i32_103 : i32 to vector<1x256xi32>
      %561 = arith.cmpi sge, %559, %560 : vector<1x256xi32>
      %c3_i32_104 = arith.constant 3 : i32
      %562 = vector.broadcast %c3_i32_104 : i32 to vector<1x256xi32>
      %563 = arith.addi %20, %562 : vector<1x256xi32>
      %c16_i32_105 = arith.constant 16 : i32
      %564 = vector.broadcast %c16_i32_105 : i32 to vector<1x256xi32>
      %565 = arith.cmpi slt, %563, %564 : vector<1x256xi32>
      %566 = arith.andi %561, %565 : vector<1x256xi1>
      %cst_106 = arith.constant 0.000000e+00 : f32
      %567 = vector.broadcast %cst_106 : f32 to vector<1x256xf32>
      %568 = arith.select %566, %557, %567 : vector<1x256xi1>, vector<1x256xf32>
      %c55 = arith.constant 55 : index
      %569 = memref.load %arg2[%c55] : memref<98xf32, #tpu.memory_space<smem>>
      %570 = vector.broadcast %569 : f32 to vector<1x256xf32>
      %571 = arith.mulf %570, %568 : vector<1x256xf32>
      %572 = arith.addf %532, %571 : vector<1x256xf32>
      %c62 = arith.constant 62 : index
      %573 = memref.load %arg2[%c62] : memref<98xf32, #tpu.memory_space<smem>>
      %574 = vector.broadcast %573 : f32 to vector<1x256xf32>
      %575 = arith.mulf %574, %568 : vector<1x256xf32>
      %576 = arith.addf %536, %575 : vector<1x256xf32>
      %c69 = arith.constant 69 : index
      %577 = memref.load %arg2[%c69] : memref<98xf32, #tpu.memory_space<smem>>
      %578 = vector.broadcast %577 : f32 to vector<1x256xf32>
      %579 = arith.mulf %578, %568 : vector<1x256xf32>
      %580 = arith.addf %540, %579 : vector<1x256xf32>
      %c76 = arith.constant 76 : index
      %581 = memref.load %arg2[%c76] : memref<98xf32, #tpu.memory_space<smem>>
      %582 = vector.broadcast %581 : f32 to vector<1x256xf32>
      %583 = arith.mulf %582, %568 : vector<1x256xf32>
      %584 = arith.addf %544, %583 : vector<1x256xf32>
      %c83 = arith.constant 83 : index
      %585 = memref.load %arg2[%c83] : memref<98xf32, #tpu.memory_space<smem>>
      %586 = vector.broadcast %585 : f32 to vector<1x256xf32>
      %587 = arith.mulf %586, %568 : vector<1x256xf32>
      %588 = arith.addf %548, %587 : vector<1x256xf32>
      %c90 = arith.constant 90 : index
      %589 = memref.load %arg2[%c90] : memref<98xf32, #tpu.memory_space<smem>>
      %590 = vector.broadcast %589 : f32 to vector<1x256xf32>
      %591 = arith.mulf %590, %568 : vector<1x256xf32>
      %592 = arith.addf %552, %591 : vector<1x256xf32>
      %c97 = arith.constant 97 : index
      %593 = memref.load %arg2[%c97] : memref<98xf32, #tpu.memory_space<smem>>
      %594 = vector.broadcast %593 : f32 to vector<1x256xf32>
      %595 = arith.mulf %594, %568 : vector<1x256xf32>
      %596 = arith.addf %556, %595 : vector<1x256xf32>
      %cst_107 = arith.constant 0.000000e+00 : f32
      %597 = vector.broadcast %cst_107 : f32 to vector<1x256xf32>
      %c48_i32 = arith.constant 48 : i32
      %598 = tpu.dynamic_rotate %572 by %c48_i32 dim 1 : vector<1x256xf32>, i32 -> vector<1x256xf32>
      %c48_i32_108 = arith.constant 48 : i32
      %599 = vector.broadcast %c48_i32_108 : i32 to vector<1x256xi32>
      %600 = arith.cmpi sge, %21, %599 : vector<1x256xi32>
      %c304_i32 = arith.constant 304 : i32
      %601 = vector.broadcast %c304_i32 : i32 to vector<1x256xi32>
      %602 = arith.cmpi slt, %21, %601 : vector<1x256xi32>
      %603 = arith.andi %600, %602 : vector<1x256xi1>
      %cst_109 = arith.constant 0.000000e+00 : f32
      %604 = vector.broadcast %cst_109 : f32 to vector<1x256xf32>
      %605 = arith.select %603, %598, %604 : vector<1x256xi1>, vector<1x256xf32>
      %606 = arith.addf %597, %605 : vector<1x256xf32>
      %c32_i32 = arith.constant 32 : i32
      %607 = tpu.dynamic_rotate %576 by %c32_i32 dim 1 : vector<1x256xf32>, i32 -> vector<1x256xf32>
      %c32_i32_110 = arith.constant 32 : i32
      %608 = vector.broadcast %c32_i32_110 : i32 to vector<1x256xi32>
      %609 = arith.cmpi sge, %21, %608 : vector<1x256xi32>
      %c288_i32 = arith.constant 288 : i32
      %610 = vector.broadcast %c288_i32 : i32 to vector<1x256xi32>
      %611 = arith.cmpi slt, %21, %610 : vector<1x256xi32>
      %612 = arith.andi %609, %611 : vector<1x256xi1>
      %cst_111 = arith.constant 0.000000e+00 : f32
      %613 = vector.broadcast %cst_111 : f32 to vector<1x256xf32>
      %614 = arith.select %612, %607, %613 : vector<1x256xi1>, vector<1x256xf32>
      %615 = arith.addf %606, %614 : vector<1x256xf32>
      %c16_i32_112 = arith.constant 16 : i32
      %616 = tpu.dynamic_rotate %580 by %c16_i32_112 dim 1 : vector<1x256xf32>, i32 -> vector<1x256xf32>
      %c16_i32_113 = arith.constant 16 : i32
      %617 = vector.broadcast %c16_i32_113 : i32 to vector<1x256xi32>
      %618 = arith.cmpi sge, %21, %617 : vector<1x256xi32>
      %c272_i32 = arith.constant 272 : i32
      %619 = vector.broadcast %c272_i32 : i32 to vector<1x256xi32>
      %620 = arith.cmpi slt, %21, %619 : vector<1x256xi32>
      %621 = arith.andi %618, %620 : vector<1x256xi1>
      %cst_114 = arith.constant 0.000000e+00 : f32
      %622 = vector.broadcast %cst_114 : f32 to vector<1x256xf32>
      %623 = arith.select %621, %616, %622 : vector<1x256xi1>, vector<1x256xf32>
      %624 = arith.addf %615, %623 : vector<1x256xf32>
      %c0_i32_115 = arith.constant 0 : i32
      %625 = vector.broadcast %c0_i32_115 : i32 to vector<1x256xi32>
      %626 = arith.cmpi sge, %21, %625 : vector<1x256xi32>
      %c256_i32 = arith.constant 256 : i32
      %627 = vector.broadcast %c256_i32 : i32 to vector<1x256xi32>
      %628 = arith.cmpi slt, %21, %627 : vector<1x256xi32>
      %629 = arith.andi %626, %628 : vector<1x256xi1>
      %cst_116 = arith.constant 0.000000e+00 : f32
      %630 = vector.broadcast %cst_116 : f32 to vector<1x256xf32>
      %631 = arith.select %629, %584, %630 : vector<1x256xi1>, vector<1x256xf32>
      %632 = arith.addf %624, %631 : vector<1x256xf32>
      %c240_i32 = arith.constant 240 : i32
      %633 = tpu.dynamic_rotate %588 by %c240_i32 dim 1 : vector<1x256xf32>, i32 -> vector<1x256xf32>
      %c-16_i32 = arith.constant -16 : i32
      %634 = vector.broadcast %c-16_i32 : i32 to vector<1x256xi32>
      %635 = arith.cmpi sge, %21, %634 : vector<1x256xi32>
      %c240_i32_117 = arith.constant 240 : i32
      %636 = vector.broadcast %c240_i32_117 : i32 to vector<1x256xi32>
      %637 = arith.cmpi slt, %21, %636 : vector<1x256xi32>
      %638 = arith.andi %635, %637 : vector<1x256xi1>
      %cst_118 = arith.constant 0.000000e+00 : f32
      %639 = vector.broadcast %cst_118 : f32 to vector<1x256xf32>
      %640 = arith.select %638, %633, %639 : vector<1x256xi1>, vector<1x256xf32>
      %641 = arith.addf %632, %640 : vector<1x256xf32>
      %c224_i32 = arith.constant 224 : i32
      %642 = tpu.dynamic_rotate %592 by %c224_i32 dim 1 : vector<1x256xf32>, i32 -> vector<1x256xf32>
      %c-32_i32 = arith.constant -32 : i32
      %643 = vector.broadcast %c-32_i32 : i32 to vector<1x256xi32>
      %644 = arith.cmpi sge, %21, %643 : vector<1x256xi32>
      %c224_i32_119 = arith.constant 224 : i32
      %645 = vector.broadcast %c224_i32_119 : i32 to vector<1x256xi32>
      %646 = arith.cmpi slt, %21, %645 : vector<1x256xi32>
      %647 = arith.andi %644, %646 : vector<1x256xi1>
      %cst_120 = arith.constant 0.000000e+00 : f32
      %648 = vector.broadcast %cst_120 : f32 to vector<1x256xf32>
      %649 = arith.select %647, %642, %648 : vector<1x256xi1>, vector<1x256xf32>
      %650 = arith.addf %641, %649 : vector<1x256xf32>
      %c208_i32 = arith.constant 208 : i32
      %651 = tpu.dynamic_rotate %596 by %c208_i32 dim 1 : vector<1x256xf32>, i32 -> vector<1x256xf32>
      %c-48_i32 = arith.constant -48 : i32
      %652 = vector.broadcast %c-48_i32 : i32 to vector<1x256xi32>
      %653 = arith.cmpi sge, %21, %652 : vector<1x256xi32>
      %c208_i32_121 = arith.constant 208 : i32
      %654 = vector.broadcast %c208_i32_121 : i32 to vector<1x256xi32>
      %655 = arith.cmpi slt, %21, %654 : vector<1x256xi32>
      %656 = arith.andi %653, %655 : vector<1x256xi1>
      %cst_122 = arith.constant 0.000000e+00 : f32
      %657 = vector.broadcast %cst_122 : f32 to vector<1x256xf32>
      %658 = arith.select %656, %651, %657 : vector<1x256xi1>, vector<1x256xf32>
      %659 = arith.addf %650, %658 : vector<1x256xf32>
      %660 = arith.negf %659 : vector<1x256xf32>
      %661 = math.exp %660 : vector<1x256xf32>
      %cst_123 = arith.constant 1.000000e+00 : f32
      %662 = vector.broadcast %cst_123 : f32 to vector<1x256xf32>
      %663 = arith.addf %662, %661 : vector<1x256xf32>
      %664 = arith.divf %662, %663 : vector<1x256xf32>
      %c0_124 = arith.constant 0 : index
      %c0_125 = arith.constant 0 : index
      %c0_126 = arith.constant 0 : index
      %665 = vector.load %arg5[%c0_124, %c0_125, %c0_126] : memref<1x1x256xf32, #tpu.memory_space<vmem>>, vector<1x1x256xf32>
      %666 = vector.shape_cast %665 : vector<1x1x256xf32> to vector<1x256xf32>
      %667 = vector.shape_cast %664 : vector<1x256xf32> to vector<1x1x256xf32>
      tpu.vector_store %arg5[%c0_124, %c0_125, %c0_126], %667 {strides = array<i32>} : memref<1x1x256xf32, #tpu.memory_space<vmem>>, vector<1x1x256xf32>,
    } else {
    }
    return
  }
  func.func @transform_0(%arg0: i32, %arg1: i32) -> i32 {
    %c0_i32 = arith.constant 0 : i32
    %c0_i32_0 = arith.constant 0 : i32
    return %c0_i32 : i32
  }
  func.func @transform_1(%arg0: i32, %arg1: i32) -> (i32, i32) {
    %c0_i32 = arith.constant 0 : i32
    %c0_i32_0 = arith.constant 0 : i32
    %c0_i32_1 = arith.constant 0 : i32
    return %c0_i32, %c0_i32_0 : i32, i32
  }
  func.func @transform_2(%arg0: i32, %arg1: i32) -> (i32, i32, i32) {
    %c0_i32 = arith.constant 0 : i32
    %c0_i32_0 = arith.constant 0 : i32
    return %arg0, %arg1, %c0_i32 : i32, i32, i32
  }
  func.func @transform_3(%arg0: i32, %arg1: i32) -> (i32, i32, i32) {
    %c0_i32 = arith.constant 0 : i32
    %c0_i32_0 = arith.constant 0 : i32
    %c0_i32_1 = arith.constant 0 : i32
    return %arg0, %c0_i32, %c0_i32_0 : i32, i32, i32
  }
}

</mosaic_0001>

<bundles_post_ra>
// kernel: spatial_attention.1
= control target key start
LH: loop header
LB: loop body
LE: loop exit
PB: predicated region body
PF: predicated region fallthrough
CT: control target
= control target key end

     0   :  { %s2579_s0 = inlined_call_operand.vmem [shape: f32[98], index: 0, kind: input, shape index: {}]   ;;  %s2580_s1 = inlined_call_operand.vmem [shape: s32[1,256], index: 1, kind: input, shape index: {}]   ;;  %s2581_s2 = inlined_call_operand.vmem [shape: f32[2,4,256], index: 2, kind: input, shape index: {}]   ;;  %s2582_s3 = inlined_call_operand.vmem [shape: f32[2,1,256], index: 3, kind: output, shape index: {}]  }
   0x1   :  { %2658 = sst [smem:[#allocation83_spill]] %s2579_s0 }
   0x2   :  { %2659 = sst [smem:[#allocation84_spill]] %s2580_s1 }
   0x3   :  { %2660 = sst [smem:[#allocation85_spill]] %s2581_s2 }
   0x4   :  { %2661 = sst [smem:[#allocation86_spill]] %s2582_s3 }
   0x5   :  { %8 = vsyncpa [#allocation5], 0  ;;  %s1584_s12 = smov 0   ;;  %s1586_s13 = smov 0  }
   0x6   :  { %s1588_s14 = smov 0  }
   0x7 LB: > { %2662 = sst [smem:[#allocation7_spill]] %s1544_s13  ;;  %s1338_s15 = sadd.s32 4294967295, %s1548_s14   ;;  %s1548_s14 = sphi %s1588_s14, %s14_s14   ;;  %s1544_s13 = sphi %s1586_s13, %s2939_s13   ;;  %s1540_s12 = sphi %s1584_s12, %s2938_s12  }
   0x8   : > { %2663 = sst [smem:[#allocation8_spill]] %s1548_s14  ;;  %s26_s16 = sadd.s32 1, %s1544_s13 }
   0x9   : > { %p28_p0 = scmp.ge.s32.totalorder %s26_s16, 2  ;;  %p1340_p1 = scmp.ge.s32.totalorder %s1548_s14, 1 }
   0xa   : > { %p127_p2 = scmp.lt.s32.totalorder %s1548_s14, 3  ;;  %p1609_p4 = scmp.eq.s32.totalorder %s1338_s15, 0 }
   0xb   : > { %s2941_s16 = smov (%p28_p0, %s26_s16), 0  ;;  %s2667_s0 = sld [smem:[#allocation83_spill]] }
   0xc   : > { %2664 = sst [smem:[#allocation9_spill]] %s2941_s16  ;;  %p1605_p3 = pnand %p1340_p1, %p127_p2 }
   0xe   : > { %p1454_p5 = pneg %p1605_p3 }
  0x10   : > { %p1455_p6 = pnand %p1609_p4, %p1454_p5 }
  0x11   : > { %s140_s21 = sshll.u32 %s2667_s0, 4  ;;  %s141_s21 = int_to_ptr.vmem [resolvable:$true] %s140_s21 }
  0x12   : > { %s1507_s22 = scalar_lea.vmem %s141_s21, 16  ;;  %p1509_p8 = pneg %p1455_p6 }
  0x13   : > { %p1508_p7 = scmp.ne.s32.totalorder %s141_s21, %s1507_s22  ;;  %p1515_p11 = scmp.lt.s32.totalorder %s141_s21, %s141_s21 }
  0x14   : > { %p1516_p12 = scmp.lt.s32.totalorder %s1507_s22, %s1507_s22 }
  0x15   : > { %p1510_p9 = pnand %p1509_p8, %p1508_p7 }
  0x16   : > { %p1517_p13 = por %p1516_p12, %p1515_p11 }
  0x17   : > { %p1511_p10 = pneg %p1510_p9 }
  0x19   : > { %p1518_p0 = pnand %p1517_p13, %p1511_p10 }
  0x1b   : > { %1521 = shalt.err (!%p1518_p0)
}
  0x1c   : > { %s1550_s23 = smov [#allocation4]   ;;  %168 = sbr.rel (%p1605_p3) target bundleno = 451 (0x1c3), region = 32 }
  0x1d   : > { %1457 = dma.vmem_to_smem (!%p1455_p6), %s141_s21, 16, %s1550_s23, [#allocation5]  }
  0x21   : > { %1535 = dma.done.wait (%p1609_p4), [#allocation5], 16  }
  0x22   : > { %1537 = vsyncadd (%p1609_p4), [#allocation5], 4294967280 }
  0x23   : > { %174 = sfence }
  0x24   : > { %p196_p1 = scmp.lt.s32.totalorder %s1540_s12, 1  ;;  %vm233_vm0 = vcmask 1043456   ;;  %s2669_s2 = sld [smem:[#allocation85_spill]]  ;;  %v1557_v34 = vmov 1966171168   ;;  %v2644_v36 = vlaneseq }
  0x25   : > { %s1551_s28 = smov 2   ;;  %s1552_s29 = smov 3   ;;  %v283_v35 = vunpack.c.l.s4 %v1557_v34 }
  0x26   : > { %s2943_s12 = smov (!%p196_p1, %s1540_s12), 1  ;;  %s1553_s30 = smov 1   ;;  %v1795_v38 = vshrl.u32 %v2644_v36, 7  ;;  %v1814_v41 = vand.u32 127, %v2644_v36 }
  0x27   : > { %2668 = sst [smem:[#allocation10_spill]] %s2943_s12  ;;  %s1449_s24 = sshll.u32 %s2943_s12, 3  ;;  %v284_v37 = vunpack.c.0.s8 %v283_v35 }
  0x28   : > { %s1554_s4 = smov 127   ;;  %s1555_s5 = smov 126   ;;  %vm330_vm4 = vcmp.lt.s32.totalorder %v1814_v41, 2  ;;  %vm388_vm5 = vcmp.lt.s32.totalorder %v1814_v41, 1  ;;  %vm496_vm8 = vcmp.lt.s32.totalorder %v1814_v41, 127  ;;  %vm554_vm11 = vcmp.lt.s32.totalorder %v1814_v41, 126 }
  0x29   : > { %s1556_s6 = smov 125   ;;  %s1672_s7 = sld [smem:[#allocation4 + $0x1]]  ;;  %v1809_v40 = vsub.s32 %v284_v37, %v1795_v38  ;;  %vm272_vm12 = vcmp.lt.s32.totalorder %v1814_v41, 3  ;;  %vm612_vm15 = vcmp.lt.s32.totalorder %v1814_v41, 125 }
  0x2a   : > { %s204_s27 = scalar_lea.vmem %s2669_s2, %s1449_s24  ;;  %s1676_s8 = sld [smem:[#allocation4 + $0x8]] }
  0x2b   : > { %v215_v0 = vld [vmem:[%s204_s27] sm:$0xff]  ;;  %s1680_s9 = sld [smem:[#allocation4 + $0xf]] }
  0x2c   : > { %v234_v1 = vsel %vm233_vm0, %v215_v0, 0.0  ;;  %v231_v2 = vcombine.high %v215_v0, %v215_v0  ;;  %v254_v21 = vsel %vm233_vm0, %v215_v0, -inf  ;;  %s1682_s10 = sld [smem:[#allocation4 + $0x16]] }
  0x2d   : > { %v235_v3 = vrot.slane %v234_v1, 4  ;;  %v255_v25 = vrot.slane %v254_v21, 4  ;;  %s1684_s11 = sld [smem:[#allocation4 + $0x1d]] }
  0x2e   : > { %v261_v4 = vsel %vm233_vm0, %v231_v2, -inf  ;;  %v241_v5 = vsel %vm233_vm0, %v231_v2, 0.0  ;;  %s1688_s15 = sld [smem:[#allocation4 + $0x24]] }
  0x2f   : > { %v236_v6 = vadd.f32 %v235_v3, %v234_v1  ;;  %v262_v7 = vrot.slane %v261_v4, 4  ;;  %v242_v8 = vrot.slane %v241_v5, 4  ;;  %v256_v27 = vmax.f32 %v254_v21, %v255_v25  ;;  %2670 = sst [smem:[#allocation11_spill]] %s1672_s7 }
  0x30   : > { %2671 = sst [smem:[#allocation12_spill]] %s1676_s8  ;;  %v357_v43 = vstv %s1672_s7  ;;  %v361_v44 = vstv %s1676_s8 }
  0x31   : > { %v237_v9 = vrot.slane %v236_v6, 2  ;;  %v263_v10 = vmax.f32 %v261_v4, %v262_v7  ;;  %v243_v11 = vadd.f32 %v242_v8, %v241_v5  ;;  %v257_v28 = vrot.slane %v256_v27, 2  ;;  %2672 = sst [smem:[#allocation13_spill]] %s1680_s9 }
  0x32   : > { %2673 = sst [smem:[#allocation14_spill]] %s1682_s10  ;;  %v365_v46 = vstv %s1680_s9  ;;  %v369_v47 = vstv %s1682_s10 }
  0x33   : > { %v238_v12 = vadd.f32 %v237_v9, %v236_v6  ;;  %v264_v13 = vrot.slane %v263_v10, 2  ;;  %v244_v14 = vrot.slane %v243_v11, 2  ;;  %v258_v29 = vmax.f32 %v256_v27, %v257_v28  ;;  %2674 = sst [smem:[#allocation15_spill]] %s1684_s11 }
  0x34   : > { %2675 = sst [smem:[#allocation16_spill]] %s1688_s15  ;;  %v373_v48 = vstv %s1684_s11  ;;  %v377_v50 = vstv %s1688_s15 }
  0x35   : > { %v239_v15 = vrot.slane %v238_v12, 1  ;;  %v265_v16 = vmax.f32 %v263_v10, %v264_v13  ;;  %v245_v17 = vadd.f32 %v244_v14, %v243_v11  ;;  %v259_v30 = vrot.slane %v258_v29, 1  ;;  %s1690_s17 = sld [smem:[#allocation4 + $0x2b]] }
  0x36   : > { %s1692_s18 = sld [smem:[#allocation4 + $0x2]] }
  0x37   : > { %v240_v18 = vadd.f32 %v239_v15, %v238_v12  ;;  %v266_v19 = vrot.slane %v265_v16, 1  ;;  %v246_v20 = vrot.slane %v245_v17, 1  ;;  %v1660_v32 = vmax.f32 %v258_v29, %v259_v30  ;;  %s1694_s19 = sld [smem:[#allocation4 + $0x9]] }
  0x38   : > { %s1696_s20 = sld [smem:[#allocation4 + $0x10]] }
  0x39   : > { %v1638_v22 = vmul.f32 0.25, %v240_v18  ;;  %v1643_v23 = vmax.f32 %v265_v16, %v266_v19  ;;  %v247_v24 = vadd.f32 %v246_v20, %v245_v17  ;;  %s1698_s21 = sld [smem:[#allocation4 + $0x17]] }
  0x3a   : > { %s1700_s22 = sld [smem:[#allocation4 + $0x1e]] }
  0x3b   : > { %326 = vrot.lane.b32.xlu1 %v1638_v22, %s1551_s28  ;;  %268 = vrot.lane.b32.xlu0 %v1638_v22, %s1552_s29  ;;  %v1647_v26 = vmul.f32 0.25, %v247_v24  ;;  %v827_v33 = vcombine.low %v1660_v32, %v1643_v23  ;;  %2676 = sst [smem:[#allocation17_spill]] %s1690_s17  ;;  %v381_v51 = vstv %s1690_s17 }
  0x3c   : > { %2677 = sst [smem:[#allocation18_spill]] %s1692_s18  ;;  %v415_v52 = vstv %s1692_s18 }
  0x3d   : > { %v447_v31 = vcombine.low %v1638_v22, %v1647_v26  ;;  %2678 = sst [smem:[#allocation19_spill]] %s1694_s19  ;;  %v419_v53 = vstv %s1694_s19  ;;  %v834_v0 = vrot.slane %v827_v33, %v1809_v40 }
  0x3e   : > { %2679 = sst [smem:[#allocation20_spill]] %s1696_s20  ;;  %v423_v54 = vstv %s1696_s20 }
  0x3f   : > { %384 = vrot.lane.b32.xlu0 %v1638_v22, %s1553_s30  ;;  %668 = vrot.lane.b32.xlu1 %v1643_v23, %s1552_s29  ;;  %2680 = sst [smem:[#allocation21_spill]] %s1698_s21  ;;  %v454_v45 = vrot.slane %v447_v31, %v1809_v40  ;;  %v427_v56 = vstv %s1698_s21  ;;  %v841_v16 = vrot.slane %v834_v0, %v1809_v40 }
  0x40   : > { %2681 = sst [smem:[#allocation22_spill]] %s1700_s22  ;;  %v431_v57 = vstv %s1700_s22 }
  0x41   : > { %s1702_s23 = sld [smem:[#allocation4 + $0x25]]  ;;  %v461_v59 = vrot.slane %v454_v45, %v1809_v40 }
  0x42   : > { %s1704_s24 = sld [smem:[#allocation4 + $0x2c]] }
  0x43   : > { %492 = vrot.lane.b32.xlu0 %v1638_v22, %s1554_s4  ;;  %328 = vrot.lane.b32.xlu1 %v1647_v26, %s1551_s28  ;;  %s1706_s25 = sld [smem:[#allocation4 + $0x4]] }
  0x44   : > { %s1708_s26 = sld [smem:[#allocation4 + $0xb]] }
  0x45   : > { %s1710_s27 = sld [smem:[#allocation4 + $0x12]] }
  0x46   : > { %s1724_s0 = sld [smem:[#allocation4 + $0x13]] }
  0x47   : > { %550 = vrot.lane.b32.xlu0 %v1638_v22, %s1555_s5  ;;  %386 = vrot.lane.b32.xlu1 %v1647_v26, %s1553_s30  ;;  %2682 = sst [smem:[#allocation23_spill]] %s1702_s23  ;;  %v435_v58 = vstv %s1702_s23 }
  0x48   : > { %2683 = sst [smem:[#allocation24_spill]] %s1704_s24  ;;  %v439_v60 = vstv %s1704_s24 }
  0x49   : > { %2684 = sst [smem:[#allocation25_spill]] %s1706_s25  ;;  %v523_v1 = vstv %s1706_s25 }
  0x4a   : > { %2685 = sst [smem:[#allocation26_spill]] %s1708_s26  ;;  %v527_v2 = vstv %s1708_s26 }
  0x4b   : > { %608 = vrot.lane.b32.xlu0 %v1638_v22, %s1556_s6  ;;  %494 = vrot.lane.b32.xlu1 %v1647_v26, %s1554_s4  ;;  %2686 = sst [smem:[#allocation27_spill]] %s1710_s27  ;;  %v531_v3 = vstv %s1710_s27 }
  0x4c   : > { %2693 = sst [smem:[#allocation34_spill]] %s1724_s0 }
  0x4d   : > { %s1726_s2 = sld [smem:[#allocation4 + $0x1a]] }
  0x4e   : > { %s1728_s16 = sld [smem:[#allocation4 + $0x21]] }
  0x4f   : > { %552 = vrot.lane.b32.xlu1 %v1647_v26, %s1555_s5  ;;  %270 = vrot.lane.b32.xlu0 %v1647_v26, %s1552_s29  ;;  %s1730_s13 = sld [smem:[#allocation4 + $0x28]] }
  0x50   : > { %s1732_s14 = sld [smem:[#allocation4 + $0x2f]] }
  0x51   : > { %s1734_s3 = sld [smem:[#allocation4]] }
  0x52   : > { %s1736_s12 = sld [smem:[#allocation4 + $0x7]] }
  0x53   : > { %610 = vrot.lane.b32.xlu1 %v1647_v26, %s1556_s6  ;;  %666 = vrot.lane.b32.xlu0 %v1660_v32, %s1552_s29  ;;  %s1714_s29 = sld [smem:[#allocation4 + $0x20]] }
  0x54   : > { %2694 = sst [smem:[#allocation35_spill]] %s1726_s2 }
  0x55   : > { %2695 = sst [smem:[#allocation36_spill]] %s1728_s16 }
  0x56   : > { %2696 = sst [smem:[#allocation37_spill]] %s1730_s13 }
  0x57   : > { %721 = vrot.lane.b32.xlu1 %v1643_v23, %s1551_s28  ;;  %719 = vrot.lane.b32.xlu0 %v1660_v32, %s1551_s28  ;;  %s1712_s28 = sld [smem:[#allocation4 + $0x19]] }
  0x58   : > { %2697 = sst [smem:[#allocation38_spill]] %s1732_s14 }
  0x59   : > { %2688 = sst [smem:[#allocation29_spill]] %s1714_s29  ;;  %v539_v5 = vstv %s1714_s29 }
  0x5a   : > { %2698 = sst [smem:[#allocation39_spill]] %s1734_s3 }
  0x5b   : > { %774 = vrot.lane.b32.xlu1 %v1643_v23, %s1553_s30  ;;  %772 = vrot.lane.b32.xlu0 %v1660_v32, %s1553_s30  ;;  %s1716_s30 = sld [smem:[#allocation4 + $0x27]] }
  0x5c   : > { %2699 = sst [smem:[#allocation40_spill]] %s1736_s12 }
  0x5d   : > { %2687 = sst [smem:[#allocation28_spill]] %s1712_s28  ;;  %v535_v4 = vstv %s1712_s28 }
  0x5e   : > { %s1746_s0 = sld [smem:[#allocation4 + $0x2a]] }
  0x5f   : > { %874 = vrot.lane.b32.xlu1 %v1643_v23, %s1554_s4  ;;  %872 = vrot.lane.b32.xlu0 %v1660_v32, %s1554_s4  ;;  %s1718_s4 = sld [smem:[#allocation4 + $0x2e]] }
  0x60   : > { %s1748_s2 = sld [smem:[#allocation4 + $0x18]] }
  0x61   : > { %2689 = sst [smem:[#allocation30_spill]] %s1716_s30 }
  0x62   : > { %s1738_s30 = sld [smem:[#allocation4 + $0xe]] }
  0x63   : > { %927 = vrot.lane.b32.xlu1 %v1643_v23, %s1555_s5  ;;  %925 = vrot.lane.b32.xlu0 %v1660_v32, %s1555_s5  ;;  %s1720_s5 = sld [smem:[#allocation4 + $0x5]] }
  0x64   : > { %2704 = sst [smem:[#allocation45_spill]] %s1746_s0 }
  0x65   : > { %2690 = sst [smem:[#allocation31_spill]] %s1718_s4 }
  0x66   : > { %s1740_s4 = sld [smem:[#allocation4 + $0x15]] }
  0x67   : > { %980 = vrot.lane.b32.xlu1 %v1643_v23, %s1556_s6  ;;  %978 = vrot.lane.b32.xlu0 %v1660_v32, %s1556_s6  ;;  %s1722_s6 = sld [smem:[#allocation4 + $0xc]]  ;;  %v1960_v32 = vsub.s32 1, %v1795_v38 }
  0x68   : > { %2700 = sst [smem:[#allocation41_spill]] %s1738_s30 }
  0x69   : > { %2691 = sst [smem:[#allocation32_spill]] %s1720_s5  ;;  %2771 = vst [vmem:[#allocation72_spill] sm:$0xff] %v1960_v32 }
  0x6a   : > { %s1742_s5 = sld [smem:[#allocation4 + $0x1c]] }
  0x6b   : > { %2705 = sst [smem:[#allocation46_spill]] %s1748_s2 }
  0x6c   : > { %2701 = sst [smem:[#allocation42_spill]] %s1740_s4 }
  0x6d   : > { %2692 = sst [smem:[#allocation33_spill]] %s1722_s6 }
  0x6e   : > { %s1744_s6 = sld [smem:[#allocation4 + $0x23]] }
  0x6f   : > { %s1750_s16 = sld [smem:[#allocation4 + $0x6]] }
  0x70   : > { %2702 = sst [smem:[#allocation43_spill]] %s1742_s5 }
  0x71   : > { %s1752_s13 = sld [smem:[#allocation4 + $0xd]] }
  0x72   : > { %s1754_s14 = sld [smem:[#allocation4 + $0x14]] }
  0x73   : > { %s1756_s3 = sld [smem:[#allocation4 + $0x1b]] }
  0x74   : > { %2703 = sst [smem:[#allocation44_spill]] %s1744_s6 }
  0x75   : > { %2706 = sst [smem:[#allocation47_spill]] %s1750_s16 }
  0x76   : > { %s1758_s12 = sld [smem:[#allocation4 + $0x22]] }
  0x77   : > { %2707 = sst [smem:[#allocation48_spill]] %s1752_s13 }
  0x78   : > { %2708 = sst [smem:[#allocation49_spill]] %s1754_s14 }
  0x79   : > { %2709 = sst [smem:[#allocation50_spill]] %s1756_s3 }
  0x7a   : > { %s1760_s30 = sld [smem:[#allocation4 + $0x29]] }
  0x7b   : > { %s1762_s4 = sld [smem:[#allocation4 + $0x30]] }
  0x7c   : > { %2710 = sst [smem:[#allocation51_spill]] %s1758_s12 }
  0x7d   : > { %s1764_s5 = sld [smem:[#allocation4 + $0x46]] }
  0x7e   : > { %s1766_s6 = sld [smem:[#allocation4 + $0x3]] }
  0x7f   : > { %s1768_s0 = sld [smem:[#allocation4 + $0x31]] }
  0x80   : > { %2711 = sst [smem:[#allocation52_spill]] %s1760_s30 }
  0x81   : > { %2712 = sst [smem:[#allocation53_spill]] %s1762_s4 }
  0x82   : > { %s1770_s2 = sld [smem:[#allocation4 + $0x32]] }
  0x83   : > { %2713 = sst [smem:[#allocation54_spill]] %s1764_s5 }
  0x84   : > { %s1772_s16 = sld [smem:[#allocation4 + $0x33]]  ;;  %v465_v30 = vstv %s1766_s6 }
  0x85   : > { %2714 = sst [smem:[#allocation55_spill]] %s1768_s0 }
  0x86   : > { %s1774_s13 = sld [smem:[#allocation4 + $0x34]] }
  0x87   : > { %s1776_s14 = sld [smem:[#allocation4 + $0x35]] }
  0x88   : > { %2715 = sst [smem:[#allocation56_spill]] %s1770_s2 }
  0x89   : > { %s1778_s3 = sld [smem:[#allocation4 + $0x36]] }
  0x8a   : > { %2716 = sst [smem:[#allocation57_spill]] %s1772_s16 }
  0x8b   : > { %s1780_s12 = sld [smem:[#allocation4 + $0xa]] }
  0x8c   : > { %s1782_s30 = sld [smem:[#allocation4 + $0x37]]  ;;  %v845_v34 = vstv %s1774_s13 }
  0x8d   : > { %2717 = sst [smem:[#allocation58_spill]] %s1776_s14 }
  0x8e   : > { %s1784_s4 = sld [smem:[#allocation4 + $0x38]] }
  0x8f   : > { %2718 = sst [smem:[#allocation59_spill]] %s1778_s3 }
  0x90   : > { %s1786_s5 = sld [smem:[#allocation4 + $0x39]] }
  0x91   : > { %s1788_s0 = sld [smem:[#allocation4 + $0x3a]]  ;;  %v469_v36 = vstv %s1780_s12 }
  0x92   : > { %2719 = sst [smem:[#allocation60_spill]] %s1782_s30 }
  0x93   : > { %s1790_s16 = sld [smem:[#allocation4 + $0x3b]] }
  0x94   : > { %2720 = sst [smem:[#allocation61_spill]] %s1784_s4 }
  0x95   : > { %s1792_s14 = sld [smem:[#allocation4 + $0x3c]] }
  0x96   : > { %2721 = sst [smem:[#allocation62_spill]] %s1786_s5 }
  0x97   : > { %2722 = sst [smem:[#allocation63_spill]] %s1788_s0 }
  0x98   : > { %s1797_s4 = sld [smem:[#allocation4 + $0x3d]] }
  0x99   : > { %2723 = sst [smem:[#allocation64_spill]] %s1790_s16 }
  0x9a   : > { %s1799_s30 = sld [smem:[#allocation4 + $0x3e]] }
  0x9b   : > { %2724 = sst [smem:[#allocation65_spill]] %s1792_s14 }
  0x9c   : > { %s1801_s5 = sld [smem:[#allocation4 + $0x11]] }
  0x9d   : > { %s2726_s1 = sld [smem:[#allocation84_spill]] }
  0x9e   : > { %2725 = sst [smem:[#allocation66_spill]] %s1797_s4 }
  0x9f   : > { %s1806_s16 = sld [smem:[#allocation4 + $0x3f]] }
  0xa0   : > { %s1811_s14 = sld [smem:[#allocation4 + $0x40]] }
  0xa1   : > { %s1816_s4 = sld [smem:[#allocation4 + $0x41]] }
  0xa2   : > { %s1826_s0 = sld [smem:[#allocation4 + $0x42]]  ;;  %v473_v31 = vstv %s1801_s5 }
  0xa3   : > { %v225_v39 = vld [vmem:[%s2726_s1] sm:$0x3]  ;;  %s1833_s3 = sld [smem:[#allocation4 + $0x43]] }
  0xa4   : > { %v1818_v42 = vadd.s32 4294967294, %v225_v39  ;;  %v1831_v49 = vadd.s32 4294967295, %v225_v39  ;;  %vm442_vm1 = vcmp.ge.s32.totalorder %v225_v39, 0  ;;  %vm443_vm2 = vcmp.lt.s32.totalorder %v225_v39, 16  ;;  %s1837_s1 = sld [smem:[#allocation4 + $0x44]] }
  0xa5   : > { %v1842_v55 = vadd.s32 1, %v225_v39  ;;  %s1844_s11 = sld [smem:[#allocation4 + $0x45]]  ;;  %v1853_v61 = vadd.s32 2, %v225_v39  ;;  %v1855_v62 = vadd.s32 4294967293, %v225_v39  ;;  %vm1859_vm3 = vmand %vm442_vm1, %vm443_vm2  ;;  %v1878_v8 = vadd.s32 3, %v225_v39 }
  0xa6   : > { %s2731_s15 = sld [smem:[#allocation30_spill]]  ;;  %v1887_v12 = vsel %vm1859_vm3, %v461_v59, 0.0  ;;  %v1925_v33 = vsel %vm1859_vm3, %v841_v16, 0.0  ;;  %vm334_vm6 = vcmp.ge.s32.totalorder %v1818_v42, 0  ;;  %vm335_vm7 = vcmp.lt.s32.totalorder %v1818_v42, 16 }
  0xa7   : > { %2727 = sst [smem:[#allocation67_spill]] %s1816_s4  ;;  %2762 = vst [vmem:[#allocation71_spill] sm:$0xff] %v1925_v33  ;;  %v1951_v37 = vmul.f32 %v845_v34, %v1925_v33  ;;  %v1965_v39 = vsub.s32 0, %v1795_v38  ;;  %v1968_v34 = vmul.f32 %v469_v36, %v1887_v12  ;;  %vm392_vm9 = vcmp.ge.s32.totalorder %v1831_v49, 0  ;;  %vm2048_vm0 = vmand %vm334_vm6, %vm335_vm7 }
  0xa8   : > { %s2732_s17 = sld [smem:[#allocation31_spill]]  ;;  %v853_v36 = vstv %s1826_s0  ;;  %vm393_vm10 = vcmp.lt.s32.totalorder %v1831_v49, 16  ;;  %v1997_v16 = vmul.f32 %v473_v31, %v1887_v12  ;;  %vm500_vm13 = vcmp.ge.s32.totalorder %v1842_v55, 0 }
  0xa9   : > { %2728 = sst [smem:[#allocation68_spill]] %s1833_s3  ;;  %2774 = vst [vmem:[#allocation73_spill] sm:$0xff] %v1965_v39  ;;  %vm501_vm14 = vcmp.lt.s32.totalorder %v1842_v55, 16  ;;  %vm558_vm1 = vcmp.ge.s32.totalorder %v1853_v61, 0  ;;  %vm559_vm2 = vcmp.lt.s32.totalorder %v1853_v61, 16  ;;  %vm276_vm3 = vcmp.ge.s32.totalorder %v1855_v62, 0  ;;  %vm2090_vm7 = vmand %vm392_vm9, %vm393_vm10 }
  0xaa   : > { %2729 = sst [smem:[#allocation69_spill]] %s1837_s1  ;;  %vm277_vm6 = vcmp.lt.s32.totalorder %v1855_v62, 16  ;;  %vm2128_vm9 = vmand %vm500_vm13, %vm501_vm14  ;;  %vm616_vm10 = vcmp.ge.s32.totalorder %v1878_v8, 0  ;;  %vm617_vm13 = vcmp.lt.s32.totalorder %v1878_v8, 16 }
  0xab   : > { %2730 = sst [smem:[#allocation70_spill]] %s1844_s11  ;;  %vm2165_vm14 = vmand %vm558_vm1, %vm559_vm2  ;;  %vm1151_vm2 = vcmp.lt.s32.totalorder %v1814_v41, 112 }
  0xac   : > { %s1850_s10 = sld [smem:[#allocation4 + $0x1f]]  ;;  %v543_v6 = vstv %s2731_s15  ;;  %vm2186_vm1 = vmand %vm276_vm3, %vm277_vm6  ;;  %vm1179_vm6 = vcmp.lt.s32.totalorder %v1814_v41, 96 }
  0xad   : > { %s1867_s23 = sld [smem:[#allocation4 + $0x4d]]  ;;  %v327_v21 = vpop.permute.xlu1 %326  ;;  %v1904_v22 = vpop.permute.xlu0 %268 }
  0xae   : > { %s2740_s21 = sld [smem:[#allocation46_spill]]  ;;  %v547_v7 = vstv %s2732_s17 }
  0xaf   : > { %s1873_s9 = sld [smem:[#allocation4 + $0x4e]] }
  0xb0   : > { %s2743_s11 = sld [smem:[#allocation39_spill]] }
  0xb1   : > { %s1880_s3 = sld [smem:[#allocation4 + $0x4f]]  ;;  %v385_v59 = vpop.permute.xlu0 %384  ;;  %v1936_v0 = vpop.permute.xlu1 %668 }
  0xb2   : > { %s1889_s29 = sld [smem:[#allocation4 + $0x50]]  ;;  %v481_v13 = vstv %s1850_s10 }
  0xb3   : > { %s1896_s18 = sld [smem:[#allocation4 + $0x51]]  ;;  %v2028_v11 = vmul.f32 %v481_v13, %v1887_v12 }
  0xb4   : > { %v477_v15 = vstv %s2740_s21  ;;  %s2753_s19 = sld [smem:[#allocation48_spill]] }
  0xb5   : > { %s2756_s22 = sld [smem:[#allocation51_spill]]  ;;  %v1914_v28 = vmul.f32 %v477_v15, %v1887_v12  ;;  %v1940_v15 = vmul.f32 %v465_v30, %v1887_v12  ;;  %v1974_v30 = vpop.permute.xlu0 %492  ;;  %v329_v35 = vpop.permute.xlu1 %328 }
  0xb6   : > { %s1910_s8 = sld [smem:[#allocation4 + $0x53]]  ;;  %v331_v45 = vsel %vm330_vm4, %v327_v21, %v329_v35  ;;  %v332_v18 = vsel %vm330_vm4, %v329_v35, %v327_v21 }
  0xb7   : > { %2745 = sst [smem:[#allocation46_spill]] %s1880_s3  ;;  %v339_v29 = vcombine.low %v332_v18, %v331_v45  ;;  %v2006_v18 = vmul.f32 %v853_v36, %v1925_v33 }
  0xb8   : > { %s1902_s3 = sld [smem:[#allocation4 + $0x52]]  ;;  %v861_v35 = vstv %s1889_s29 }
  0xb9   : > { %2752 = sst [smem:[#allocation39_spill]] %s1896_s18  ;;  %2781 = vst [vmem:[#allocation74_spill] sm:$0xff] %v2006_v18  ;;  %v346_v45 = vrot.slane %v339_v29, %v1809_v40  ;;  %v2011_v17 = vpop.permute.xlu0 %550 }
  0xba   : > { %s1918_s1 = sld [smem:[#allocation4 + $0x26]] }
  0xbb   : > { %s2761_s27 = sld [smem:[#allocation55_spill]] }
  0xbc   : > { %2759 = sst [smem:[#allocation48_spill]] %s1910_s8 }
  0xbd   : > { %s1928_s26 = sld [smem:[#allocation4 + $0x54]]  ;;  %v609_v10 = vpop.permute.xlu0 %608 }
  0xbe   : > { %s2764_s6 = sld [smem:[#allocation64_spill]] }
  0xbf   : > { %s2765_s20 = sld [smem:[#allocation58_spill]] }
  0xc0   : > { %s1934_s15 = sld [smem:[#allocation4 + $0x55]]  ;;  %v485_v9 = vstv %s1918_s1 }
  0xc1   : > { %s2768_s13 = sld [smem:[#allocation61_spill]]  ;;  %v2059_v42 = vmul.f32 %v485_v9, %v1887_v12  ;;  %v271_v23 = vpop.permute.xlu0 %270 }
  0xc2   : > { %s1944_s21 = sld [smem:[#allocation4 + $0x56]] }
  0xc3   : > { %s2769_s18 = sld [smem:[#allocation62_spill]] }
  0xc4   : > { %v849_v63 = vstv %s2764_s6  ;;  %s1954_s24 = sld [smem:[#allocation4 + $0x57]] }
  0xc5   : > { %s1962_s12 = sld [smem:[#allocation4 + $0x58]]  ;;  %v1980_v38 = vmul.f32 %v849_v63, %v1925_v33  ;;  %v387_v63 = vpop.permute.xlu1 %386 }
  0xc6   : > { %s1972_s6 = sld [smem:[#allocation4 + $0x59]]  ;;  %v389_v36 = vsel %vm388_vm5, %v385_v59, %v387_v63  ;;  %v390_v29 = vsel %vm388_vm5, %v387_v63, %v385_v59  ;;  %v353_v59 = vrot.slane %v346_v45, %v1809_v40  ;;  %v2041_v63 = vmul.f32 %v861_v35, %v1925_v33 }
  0xc7   : > { %s1983_s25 = sld [smem:[#allocation4 + $0x5a]]  ;;  %v397_v14 = vcombine.low %v390_v29, %v389_v36 }
  0xc8   : > { %s1991_s5 = sld [smem:[#allocation4 + $0x2d]]  ;;  %2788 = vst [vmem:[#allocation75_spill] sm:$0xff] %v2041_v63  ;;  %v355_v9 = vsel %vm2048_vm0, %v353_v59, 0.0 }
  0xc9   : > { %s2000_s28 = sld [smem:[#allocation4 + $0x5e]]  ;;  %v404_v29 = vrot.slane %v397_v14, %v1809_v40  ;;  %v495_v45 = vpop.permute.xlu1 %494 }
  0xca   : > { %s2780_s17 = sld [smem:[#allocation70_spill]]  ;;  %v865_v21 = vstv %s1954_s24  ;;  %v497_v26 = vsel %vm496_vm8, %v1974_v30, %v495_v45  ;;  %v498_v14 = vsel %vm496_vm8, %v495_v45, %v1974_v30 }
  0xcb   : > { %2772 = sst [smem:[#allocation51_spill]] %s1962_s12  ;;  %v2068_v35 = vmul.f32 %v865_v21, %v1925_v33  ;;  %v411_v21 = vrot.slane %v404_v29, %v1809_v40  ;;  %v505_v24 = vcombine.low %v497_v26, %v498_v14  ;;  %v2102_v26 = vmul.f32 %v357_v43, %v355_v9 }
  0xcc   : > { %2776 = sst [smem:[#allocation55_spill]] %s1972_s6  ;;  %v273_v43 = vsel %vm272_vm12, %v1904_v22, %v271_v23 }
  0xcd   : > { %2777 = sst [smem:[#allocation64_spill]] %s1983_s25  ;;  %2791 = vst [vmem:[#allocation76_spill] sm:$0xff] %v2068_v35  ;;  %v553_v31 = vpop.permute.xlu1 %552  ;;  %v512_v49 = vrot.slane %v505_v24, %v1809_v40  ;;  %v413_v24 = vsel %vm2090_vm7, %v411_v21, 0.0  ;;  %v370_v21 = vmul.f32 %v369_v47, %v355_v9 }
  0xce   : > { %s2008_s2 = sld [smem:[#allocation4 + $0x5b]]  ;;  %v489_v25 = vstv %s1991_s5  ;;  %v555_v14 = vsel %vm554_vm11, %v2011_v17, %v553_v31  ;;  %v416_v47 = vmul.f32 %v415_v52, %v413_v24  ;;  %v2180_v61 = vmul.f32 %v439_v60, %v413_v24 }
  0xcf   : > { %s2783_s10 = sld [smem:[#allocation46_spill]]  ;;  %v869_v13 = vstv %s2000_s28  ;;  %v2084_v19 = vmul.f32 %v489_v25, %v1887_v12  ;;  %v2106_v12 = vmul.f32 %v361_v44, %v355_v9  ;;  %v274_v44 = vsel %vm272_vm12, %v271_v23, %v1904_v22  ;;  %v667_v22 = vpop.permute.xlu0 %666 }
  0xd0   : > { %s2018_s4 = sld [smem:[#allocation4 + $0x5c]]  ;;  %v2098_v29 = vmul.f32 %v869_v13, %v1925_v33  ;;  %v556_v13 = vsel %vm554_vm11, %v553_v31, %v2011_v17  ;;  %v519_v17 = vrot.slane %v512_v49, %v1809_v40  ;;  %v281_v20 = vcombine.low %v274_v44, %v273_v43 }
  0xd1   : > { %s2785_s0 = sld [smem:[#allocation39_spill]]  ;;  %2794 = vst [vmem:[#allocation77_spill] sm:$0xff] %v2084_v19  ;;  %v563_v31 = vcombine.low %v555_v14, %v556_v13  ;;  %v611_v27 = vpop.permute.xlu1 %610  ;;  %v366_v23 = vmul.f32 %v365_v46, %v355_v9  ;;  %v374_v49 = vmul.f32 %v373_v48, %v355_v9  ;;  %v378_v14 = vmul.f32 %v377_v50, %v355_v9 }
  0xd2   : > { %s2030_s29 = sld [smem:[#allocation4 + $0x5d]]  ;;  %2797 = vst [vmem:[#allocation78_spill] sm:$0xff] %v2098_v29  ;;  %v613_v55 = vsel %vm612_vm15, %v609_v10, %v611_v27  ;;  %v614_v45 = vsel %vm612_vm15, %v611_v27, %v609_v10  ;;  %v288_v43 = vrot.slane %v281_v20, %v1809_v40  ;;  %v382_v46 = vmul.f32 %v381_v51, %v355_v9 }
  0xd3   : > { %s2036_s7 = sld [smem:[#allocation4 + $0x5f]]  ;;  %v570_v13 = vrot.slane %v563_v31, %v1809_v40  ;;  %v420_v48 = vmul.f32 %v419_v53, %v413_v24  ;;  %v521_v50 = vsel %vm2128_vm9, %v519_v17, 0.0  ;;  %v424_v10 = vmul.f32 %v423_v54, %v413_v24  ;;  %v720_v54 = vpop.permute.xlu0 %719 }
  0xd4   : > { %2782 = sst [smem:[#allocation58_spill]] %s2008_s2  ;;  %v428_v20 = vmul.f32 %v427_v56, %v413_v24  ;;  %v621_v53 = vcombine.low %v613_v55, %v614_v45  ;;  %v2172_v9 = vmul.f32 %v431_v57, %v413_v24  ;;  %v2176_v56 = vmul.f32 %v435_v58, %v413_v24 }
  0xd5   : > { %v577_v52 = vrot.slane %v570_v13, %v1809_v40  ;;  %v722_v27 = vpop.permute.xlu1 %721  ;;  %v295_v45 = vrot.slane %v288_v43, %v1809_v40  ;;  %v2193_v57 = vmul.f32 %v523_v1, %v521_v50  ;;  %s2824_s2 = sld [smem:[#allocation41_spill]]  ;;  %v2197_v58 = vmul.f32 %v527_v2, %v521_v50 }
  0xd6   : > { %2784 = sst [smem:[#allocation61_spill]] %s2018_s4  ;;  %v670_v60 = vsel %vm272_vm12, %v667_v22, %v1936_v0  ;;  %v671_v62 = vsel %vm272_vm12, %v1936_v0, %v667_v22  ;;  %v2207_v24 = vmul.f32 %v531_v3, %v521_v50  ;;  %v2211_v1 = vmul.f32 %v535_v4, %v521_v50 }
  0xd7   : > { %s2823_s4 = sld [smem:[#allocation40_spill]]  ;;  %v2215_v17 = vmul.f32 %v539_v5, %v521_v50  ;;  %v2219_v2 = vmul.f32 %v543_v6, %v521_v50  ;;  %v2223_v31 = vmul.f32 %v547_v7, %v521_v50  ;;  %v579_v0 = vsel %vm2165_vm14, %v577_v52, 0.0  ;;  %v773_v5 = vpop.permute.xlu0 %772 }
  0xd8   : > { %2786 = sst [smem:[#allocation62_spill]] %s2030_s29  ;;  %2827 = vst [vmem:[#allocation79_spill] sm:$0xff] %v2211_v1  ;;  %v297_v3 = vsel %vm2186_vm1, %v295_v45, 0.0  ;;  %v628_v4 = vrot.slane %v621_v53, %v1809_v40  ;;  %v2832_v55 = vstv %s2743_s11  ;;  %v674_v35 = vcombine.low %v671_v62, %v670_v60 }
  0xd9   : > { %2787 = sst [smem:[#allocation70_spill]] %s2036_s7  ;;  %2830 = vst [vmem:[#allocation80_spill] sm:$0xff] %v2223_v31  ;;  %v775_v22 = vpop.permute.xlu1 %774  ;;  %v300_v13 = vmul.f32 %v2832_v55, %v297_v3  ;;  %v723_v45 = vsel %vm330_vm4, %v720_v54, %v722_v27  ;;  %v724_v53 = vsel %vm330_vm4, %v722_v27, %v720_v54  ;;  %vm2269_vm4 = vmand %vm616_vm10, %vm617_vm13  ;;  %v2881_v51 = vstv %s2765_s20 }
  0xda   : > { %s2825_s12 = sld [smem:[#allocation42_spill]]  ;;  %v635_v18 = vrot.slane %v628_v4, %v1809_v40  ;;  %vm1049_vm12 = vcmp.ge.s32.totalorder %v1814_v41, 48 }
  0xdb   : > { %s2826_s6 = sld [smem:[#allocation43_spill]]  ;;  %v2834_v30 = vstv %s2824_s2  ;;  %v873_v32 = vpop.permute.xlu0 %872 }
  0xdc   : > { %s2828_s28 = sld [smem:[#allocation44_spill]]  ;;  %v308_v33 = vmul.f32 %v2834_v30, %v297_v3 }
  0xdd   : > { %s2829_s5 = sld [smem:[#allocation45_spill]]  ;;  %v2833_v43 = vstv %s2823_s4  ;;  %v875_v39 = vpop.permute.xlu1 %874 }
  0xde   : > { %s2831_s25 = sld [smem:[#allocation32_spill]]  ;;  %v304_v6 = vmul.f32 %v2833_v43, %v297_v3  ;;  %v367_v62 = vadd.f32 %v366_v23, %v308_v33 }
  0xdf   : > { %s2836_s8 = sld [smem:[#allocation33_spill]] }
  0xe0   : > { %v2835_v29 = vstv %s2825_s12  ;;  %s2838_s29 = sld [smem:[#allocation34_spill]]  ;;  %v363_v60 = vadd.f32 %v2106_v12, %v304_v6 }
  0xe1   : > { %v312_v7 = vmul.f32 %v2835_v29, %v297_v3  ;;  %v2837_v50 = vstv %s2826_s6  ;;  %s2839_s1 = sld [smem:[#allocation35_spill]]  ;;  %v359_v29 = vadd.f32 %v2102_v26, %v300_v13 }
  0xe2   : > { %v316_v52 = vmul.f32 %v2837_v50, %v297_v3  ;;  %v2840_v1 = vstv %s2828_s28  ;;  %s2841_s11 = sld [smem:[#allocation36_spill]]  ;;  %v421_v8 = vadd.f32 %v420_v48, %v363_v60 }
  0xe3   : > { %v320_v55 = vmul.f32 %v2840_v1, %v297_v3  ;;  %v2842_v43 = vstv %s2829_s5  ;;  %s2843_s7 = sld [smem:[#allocation37_spill]]  ;;  %v371_v63 = vadd.f32 %v370_v21, %v312_v7 }
  0xe4   : > { %v324_v30 = vmul.f32 %v2842_v43, %v297_v3  ;;  %s2844_s24 = sld [smem:[#allocation38_spill]]  ;;  %v2845_v31 = vstv %s2831_s25  ;;  %v375_v6 = vadd.f32 %v374_v49, %v316_v52  ;;  %v777_v49 = vsel %vm388_vm5, %v775_v22, %v773_v5 }
  0xe5   : > { %v582_v50 = vmul.f32 %v2845_v31, %v579_v0  ;;  %v2846_v27 = vstv %s2836_s8  ;;  %v429_v26 = vadd.f32 %v428_v20, %v371_v63  ;;  %v379_v7 = vadd.f32 %v378_v14, %v320_v55  ;;  %s2856_s4 = sld [smem:[#allocation47_spill]] }
  0xe6   : > { %v2255_v54 = vmul.f32 %v2846_v27, %v579_v0  ;;  %v2847_v1 = vstv %s2838_s29  ;;  %v383_v63 = vadd.f32 %v382_v46, %v324_v30  ;;  %v417_v20 = vadd.f32 %v416_v47, %v359_v29  ;;  %s2857_s2 = sld [smem:[#allocation49_spill]] }
  0xe7   : > { %v2259_v19 = vmul.f32 %v2847_v1, %v579_v0  ;;  %v2848_v3 = vstv %s2839_s1  ;;  %v2286_v27 = vadd.f32 %v1914_v28, %v429_v26  ;;  %v425_v1 = vadd.f32 %v424_v10, %v367_v62  ;;  %s2858_s12 = sld [smem:[#allocation50_spill]] }
  0xe8   : > { %v2263_v43 = vmul.f32 %v2848_v3, %v579_v0  ;;  %v2852_v12 = vstv %s2841_s11  ;;  %v637_v3 = vsel %vm2269_vm4, %v635_v18, 0.0  ;;  %v876_v28 = vsel %vm496_vm8, %v873_v32, %v875_v39  ;;  %s2861_s6 = sld [smem:[#allocation52_spill]] }
  0xe9   : > { %v2275_v23 = vmul.f32 %v2852_v12, %v579_v0  ;;  %v2853_v21 = vstv %s2843_s7  ;;  %v681_v12 = vrot.slane %v674_v35, %v1809_v40  ;;  %v877_v18 = vsel %vm496_vm8, %v875_v39, %v873_v32  ;;  %s2863_s28 = sld [smem:[#allocation53_spill]] }
  0xea   : > { %2849 = vst [vmem:[#allocation81_spill] sm:$0xff] %v2263_v43  ;;  %v2279_v31 = vmul.f32 %v2853_v21, %v579_v0  ;;  %v2855_v4 = vstv %s2844_s24  ;;  %v928_v43 = vpop.permute.xlu1 %927  ;;  %v926_v21 = vpop.permute.xlu0 %925  ;;  %v880_v48 = vcombine.low %v876_v28, %v877_v18  ;;  %v2308_v52 = vadd.f32 %v2176_v56, %v379_v7  ;;  %s2864_s5 = sld [smem:[#allocation56_spill]] }
  0xeb   : > { %v2283_v13 = vmul.f32 %v2855_v4, %v579_v0  ;;  %v776_v0 = vsel %vm388_vm5, %v773_v5, %v775_v22  ;;  %v688_v14 = vrot.slane %v681_v12, %v1809_v40  ;;  %v929_v35 = vsel %vm554_vm11, %v926_v21, %v928_v43  ;;  %s2869_s25 = sld [smem:[#allocation57_spill]] }
  0xec   : > { %2854 = vst [vmem:[#allocation82_spill] sm:$0xff] %v2279_v31  ;;  %v727_v31 = vcombine.low %v724_v53, %v723_v45  ;;  %v780_v46 = vcombine.low %v777_v49, %v776_v0  ;;  %v930_v10 = vsel %vm554_vm11, %v928_v43, %v926_v21  ;;  %v467_v22 = vadd.f32 %v1940_v15, %v417_v20  ;;  %s2876_s8 = sld [smem:[#allocation65_spill]] }
  0xed   : > { %v433_v5 = vadd.f32 %v2172_v9, %v375_v6  ;;  %v933_v32 = vcombine.low %v929_v35, %v930_v10  ;;  %v887_v30 = vrot.slane %v880_v48, %v1809_v40  ;;  %v471_v9 = vadd.f32 %v1968_v34, %v421_v8  ;;  %s2877_s29 = sld [smem:[#allocation66_spill]] }
  0xee   : > { %v734_v47 = vrot.slane %v727_v31, %v1809_v40  ;;  %v787_v45 = vrot.slane %v780_v46, %v1809_v40  ;;  %v981_v39 = vpop.permute.xlu1 %980  ;;  %v979_v53 = vpop.permute.xlu0 %978  ;;  %v2317_v56 = vadd.f32 %v2180_v61, %v383_v63  ;;  %v525_v62 = vadd.f32 %v2193_v57, %v467_v22  ;;  %s2880_s1 = sld [smem:[#allocation60_spill]] }
  0xef   : > { %v982_v15 = vsel %vm612_vm15, %v979_v53, %v981_v39  ;;  %v940_v29 = vrot.slane %v933_v32, %v1809_v40  ;;  %v983_v60 = vsel %vm612_vm15, %v981_v39, %v979_v53  ;;  %v2325_v43 = vsel %vm2186_vm1, %v688_v14, 0.0  ;;  %s2885_s20 = sld [smem:[#allocation67_spill]] }
  0xf0   : > { %v741_v55 = vrot.slane %v734_v47, %v1809_v40  ;;  %v794_v26 = vrot.slane %v787_v45, %v1809_v40  ;;  %v894_v34 = vrot.slane %v887_v30, %v1809_v40  ;;  %v986_v61 = vcombine.low %v982_v15, %v983_v60  ;;  %s2921_s11 = sld [smem:[#allocation62_spill]] }
  0xf1   : > { %v2859_v31 = vstv %s2856_s4  ;;  %v2860_v6 = vstv %s2753_s19  ;;  %v2862_v63 = vstv %s2857_s2  ;;  %v583_v8 = vadd.f32 %v582_v50, %v525_v62  ;;  %s2867_s19 = sld [smem:[#allocation54_spill]] }
  0xf2   : > { %v640_v4 = vmul.f32 %v2859_v31, %v637_v3  ;;  %v644_v7 = vmul.f32 %v2860_v6, %v637_v3  ;;  %v648_v20 = vmul.f32 %v2862_v63, %v637_v3  ;;  %v2337_v44 = vsel %vm2048_vm0, %v741_v55, 0.0  ;;  %s2923_s7 = sld [smem:[#allocation64_spill]] }
  0xf3   : > { %v947_v57 = vrot.slane %v940_v29, %v1809_v40  ;;  %v993_v12 = vrot.slane %v986_v61, %v1809_v40  ;;  %v529_v21 = vadd.f32 %v2197_v58, %v471_v9  ;;  %v2865_v0 = vstv %s2858_s12  ;;  %s2504_s24 = sld [smem:[#allocation4 + $0x4a]] }
  0xf4   : > { %v2344_v49 = vmul.f32 %v2865_v0, %v637_v3  ;;  %v2866_v28 = vstv %s2756_s22  ;;  %v641_v46 = vadd.f32 %v640_v4, %v583_v8  ;;  %v2868_v50 = vstv %s2761_s27  ;;  %s2872_s22 = sld [smem:[#allocation59_spill]] }
  0xf5   : > { %v656_v14 = vmul.f32 %v2866_v28, %v637_v3  ;;  %v693_v36 = vmul.f32 %v2868_v50, %v2325_v43  ;;  %v2353_v18 = vsel %vm2090_vm7, %v794_v26, 0.0  ;;  %v2357_v35 = vsel %vm2128_vm9, %v894_v34, 0.0  ;;  %s2874_s27 = sld [smem:[#allocation63_spill]] }
  0xf6   : > { %v1000_v58 = vrot.slane %v993_v12, %v1809_v40  ;;  %v587_v47 = vadd.f32 %v2255_v54, %v529_v21  ;;  %v2870_v48 = vstv %s2861_s6  ;;  %v2871_v22 = vstv %s2863_s28  ;;  %s2511_s4 = sld [smem:[#allocation4 + $0x4b]]  ;;  %s1560_s6 = smov 16  }
  0xf7   : > { %v660_v10 = vmul.f32 %v2870_v48, %v637_v3  ;;  %v2365_v45 = vmul.f32 %v2871_v22, %v637_v3  ;;  %v694_v32 = vadd.f32 %v693_v36, %v641_v46  ;;  %v2873_v59 = vstv %s2864_s5  ;;  %s2518_s2 = sld [smem:[#allocation4 + $0x4c]]  ;;  %s1561_s28 = smov 112  }
  0xf8   : > { %v746_v39 = vmul.f32 %v2873_v59, %v2337_v44  ;;  %v2372_v25 = vsel %vm2165_vm14, %v947_v57, 0.0  ;;  %v645_v53 = vadd.f32 %v644_v7, %v587_v47  ;;  %v2875_v55 = vstv %s2768_s13  ;;  %s2890_s13 = sld [smem:[#allocation69_spill]]  ;;  %s1562_s5 = smov 96  }
  0xf9   : > { %v697_v54 = vmul.f32 %v2875_v55, %v2325_v43  ;;  %v475_v30 = vadd.f32 %v1997_v16, %v425_v1  ;;  %v2878_v3 = vstv %s2867_s19  ;;  %v2879_v29 = vstv %s2869_s25  ;;  %s2930_s12 = sld [smem:[#allocation70_spill]]  ;;  %s1563_s19 = smov 80  }
  0xfa   : > { %v2381_v15 = vmul.f32 %v2878_v3, %v2325_v43  ;;  %v747_v9 = vadd.f32 %v746_v39, %v694_v32  ;;  %v799_v60 = vmul.f32 %v2879_v29, %v2353_v18  ;;  %v899_v62 = vmul.f32 %v2881_v51, %v2357_v35  ;;  %s2934_s25 = sld [smem:[#allocation10_spill]] }
  0xfb   : > { %v2391_v26 = vsel %vm2269_vm4, %v1000_v58, 0.0  ;;  %v698_v34 = vadd.f32 %v697_v54, %v645_v53  ;;  %v2882_v16 = vstv %s2769_s18  ;;  %v533_v61 = vadd.f32 %v2207_v24, %v475_v30  ;;  %s2888_s18 = sld [smem:[#allocation68_spill]] }
  0xfc   : > { %v750_v1 = vmul.f32 %v2882_v16, %v2337_v44  ;;  %v800_v31 = vadd.f32 %v799_v60, %v747_v9  ;;  %v2883_v4 = vstv %s2872_s22  ;;  %v2884_v7 = vstv %s2874_s27 }
  0xfd   : > { %v952_v6 = vmul.f32 %v2883_v4, %v2372_v25  ;;  %v803_v63 = vmul.f32 %v2884_v7, %v2353_v18  ;;  %v483_v33 = vadd.f32 %v2028_v11, %v433_v5  ;;  %v2886_v57 = vstv %s2876_s8  ;;  %v2900_v4 = vld [vmem:[#allocation82_spill] sm:$0xff] }
  0xfe   : > { %v751_v8 = vadd.f32 %v750_v1, %v698_v34  ;;  %v903_v12 = vmul.f32 %v2886_v57, %v2357_v35  ;;  %v2887_v21 = vstv %s2877_s29  ;;  %v591_v24 = vadd.f32 %v2259_v19, %v533_v61  ;;  %s2935_s29 = sld [smem:[#allocation86_spill]] }
  0xff   : > { %v956_v0 = vmul.f32 %v2887_v21, %v2372_v25  ;;  %v847_v28 = vadd.f32 %v1951_v37, %v800_v31  ;;  %v2889_v46 = vstv %s2880_s1  ;;  %v2891_v36 = vstv %s1806_s16  ;;  %s2431_s16 = sld [smem:[#allocation4 + $0x60]]  ;;  %v2904_v21 = vld [vmem:[#allocation72_spill] sm:$0xff] }
 0x100   : > { %v1005_v50 = vmul.f32 %v2889_v46, %v2391_v26  ;;  %v701_v58 = vmul.f32 %v2891_v36, %v2325_v43  ;;  %v541_v11 = vadd.f32 %v2215_v17, %v483_v33  ;;  %v804_v5 = vadd.f32 %v803_v63, %v751_v8  ;;  %s1347_s22 = sshll.u32 %s2934_s25, 1 }
 0x101   : > { %v2892_v47 = vstv %s1799_s30  ;;  %v649_v22 = vadd.f32 %v648_v20, %v591_v24  ;;  %v2893_v19 = vstv %s1811_s14  ;;  %v900_v37 = vadd.f32 %v899_v62, %v847_v28  ;;  %s2453_s14 = sld [smem:[#allocation4 + $0x47]]  ;;  %v2905_v28 = vld [vmem:[#allocation73_spill] sm:$0xff] }
 0x102   : > { %v1009_v48 = vmul.f32 %v2892_v47, %v2391_v26  ;;  %v754_v32 = vmul.f32 %v2893_v19, %v2337_v44  ;;  %v2894_v59 = vstv %s2885_s20  ;;  %v599_v53 = vadd.f32 %v2275_v23, %v541_v11  ;;  %v2908_v47 = vld [vmem:[#allocation80_spill] sm:$0xff]  ;;  %s2481_s30 = sld [smem:[#allocation4 + $0x49]] }
 0x103   : > { %v807_v39 = vmul.f32 %v2894_v59, %v2353_v18  ;;  %v487_v17 = vadd.f32 %v2059_v42, %v2308_v52  ;;  %v851_v55 = vadd.f32 %v1980_v38, %v804_v5  ;;  %v702_v54 = vadd.f32 %v701_v58, %v649_v22  ;;  %v2906_v58 = vld [vmem:[#allocation74_spill] sm:$0xff] }
 0x104   : > { %v2895_v20 = vstv %s2888_s18  ;;  %v2896_v3 = vstv %s2890_s13  ;;  %v953_v29 = vadd.f32 %v952_v6, %v900_v37  ;;  %v657_v60 = vadd.f32 %v656_v14, %v599_v53  ;;  %v2901_v14 = vld [vmem:[#allocation77_spill] sm:$0xff]  ;;  %s208_s1 = scalar_lea.vmem %s2935_s29, %s1347_s22 }
 0x105   : > { %v907_v30 = vmul.f32 %v2895_v20, %v2357_v35  ;;  %v960_v9 = vmul.f32 %v2896_v3, %v2372_v25  ;;  %v2897_v23 = vstv %s1867_s23  ;;  %v545_v42 = vadd.f32 %v2219_v2, %v487_v17  ;;  %s2911_s23 = sld [smem:[#allocation58_spill]] }
 0x106   : > { %v709_v51 = vmul.f32 %v2897_v23, %v2325_v43  ;;  %v904_v52 = vadd.f32 %v903_v12, %v851_v55  ;;  %v755_v62 = vadd.f32 %v754_v32, %v702_v54  ;;  %v2898_v38 = vstv %s2780_s17  ;;  %s2909_s17 = sld [smem:[#allocation48_spill]] }
 0x107   : > { %v1013_v34 = vmul.f32 %v2898_v38, %v2391_v26  ;;  %v2899_v16 = vstv %s1873_s9  ;;  %v1006_v61 = vadd.f32 %v1005_v50, %v953_v29  ;;  %v603_v6 = vadd.f32 %v2900_v4, %v545_v42  ;;  %s1558_s9 = smov 48   ;;  %v2914_v29 = vld [vmem:[#allocation75_spill] sm:$0xff] }
 0x108   : > { %v762_v1 = vmul.f32 %v2899_v16, %v2337_v44  ;;  %v710_v31 = vadd.f32 %v709_v51, %v657_v60  ;;  %v491_v7 = vadd.f32 %v2901_v14, %v2317_v56  ;;  %v957_v63 = vadd.f32 %v956_v0, %v904_v52 }
 0x109   : > { %v808_v2 = vadd.f32 %v807_v39, %v755_v62  ;;  %v2902_v33 = vstv %s2783_s10  ;;  %v2903_v57 = vstv %s1928_s26  ;;  %v1039_v24 = vrot.slane %v1006_v61, %v2904_v21  ;;  %s2472_s26 = sld [smem:[#allocation4 + $0x48]] }
 0x10a   : > { %v815_v8 = vmul.f32 %v2902_v33, %v2353_v18  ;;  %v713_v12 = vmul.f32 %v2903_v57, %v2325_v43  ;;  %v1035_v46 = vrot.slane %v1006_v61, %v2905_v28  ;;  %v763_v50 = vadd.f32 %v762_v1, %v710_v31  ;;  %s2486_s10 = sld [smem:[#allocation4 + $0x61]]  ;;  %v2920_v1 = vld [vmem:[#allocation79_spill] sm:$0xff]  ;;  %v2927_v57 = vld [vmem:[#allocation81_spill] sm:$0xff] }
 0x10b   : > { %v661_v56 = vadd.f32 %v660_v10, %v603_v6  ;;  %v1010_v36 = vadd.f32 %v1009_v48, %v957_v63  ;;  %v855_v0 = vadd.f32 %v2906_v58, %v808_v2  ;;  %v2907_v11 = vstv %s2785_s0  ;;  %1044 = vrot.lane.b32.xlu1 %v1039_v24, %s1558_s9  ;;  %s2916_s0 = sld [smem:[#allocation61_spill]]  ;;  %v2925_v63 = vld [vmem:[#allocation76_spill] sm:$0xff] }
 0x10c   : > { %v915_v5 = vmul.f32 %v2907_v11, %v2357_v35  ;;  %v549_v22 = vadd.f32 %v2908_v47, %v491_v7  ;;  %1042 = vrot.lane.b32.xlu0 %v1035_v46, %s1558_s9  ;;  %v816_v19 = vadd.f32 %v815_v8, %v763_v50  ;;  %v2910_v37 = vstv %s1934_s15  ;;  %s2915_s15 = sld [smem:[#allocation51_spill]] }
 0x10d   : > { %v714_v32 = vadd.f32 %v713_v12, %v661_v56  ;;  %v766_v59 = vmul.f32 %v2910_v37, %v2337_v44  ;;  %v975_v39 = vstv %s2431_s16  ;;  %v908_v10 = vadd.f32 %v907_v30, %v855_v0 }
 0x10e   : > { %v2912_v48 = vstv %s1902_s3  ;;  %v2913_v17 = vstv %s1944_s21  ;;  %v607_v54 = vadd.f32 %v2283_v13, %v549_v22  ;;  %v1067_v20 = vrot.slane %v1010_v36, %v2904_v21  ;;  %s2919_s3 = sld [smem:[#allocation55_spill]]  ;;  %s1559_s21 = smov 32  }
 0x10f   : > { %v968_v53 = vmul.f32 %v2912_v48, %v2372_v25  ;;  %v819_v55 = vmul.f32 %v2913_v17, %v2353_v18  ;;  %v1063_v3 = vrot.slane %v1010_v36, %v2905_v28  ;;  %v863_v60 = vadd.f32 %v2914_v29, %v816_v19  ;;  %v2933_v29 = vld [vmem:[#allocation71_spill] sm:$0xff] }
 0x110   : > { %v767_v23 = vadd.f32 %v766_v59, %v714_v32  ;;  %v961_v30 = vadd.f32 %v960_v9, %v908_v10  ;;  %v2917_v51 = vstv %s2909_s17  ;;  %v665_v13 = vadd.f32 %v2365_v45, %v607_v54  ;;  %1072 = vrot.lane.b32.xlu1 %v1067_v20, %s1559_s21 }
 0x111   : > { %v1021_v42 = vmul.f32 %v2917_v51, %v2391_v26  ;;  %v2918_v52 = vstv %s2911_s23  ;;  %1070 = vrot.lane.b32.xlu0 %v1063_v3, %s1559_s21  ;;  %v916_v38 = vadd.f32 %v915_v5, %v863_v60  ;;  %v537_v61 = vadd.f32 %v2920_v1, %v2286_v27 }
 0x112   : > { %v717_v62 = vmul.f32 %v2918_v52, %v2325_v43  ;;  %v820_v16 = vadd.f32 %v819_v55, %v767_v23  ;;  %v757_v31 = vstv %s2453_s14  ;;  %v1014_v9 = vadd.f32 %v1013_v34, %v961_v30 }
 0x113   : > { %v2922_v4 = vstv %s2915_s15  ;;  %v2924_v14 = vstv %s2916_s0  ;;  %v969_v43 = vadd.f32 %v968_v53, %v916_v38  ;;  %v595_v27 = vadd.f32 %v2927_v57, %v537_v61 }
 0x114   : > { %v919_v6 = vmul.f32 %v2922_v4, %v2357_v35  ;;  %v718_v45 = vadd.f32 %v717_v62, %v665_v13  ;;  %v770_v7 = vmul.f32 %v2924_v14, %v2337_v44  ;;  %v867_v2 = vadd.f32 %v2925_v63, %v820_v16 }
 0x115   : > { %v2926_v33 = vstv %s2919_s3  ;;  %v1095_v34 = vrot.slane %v1014_v9, %v2904_v21  ;;  %v1091_v12 = vrot.slane %v1014_v9, %v2905_v28  ;;  %v2928_v46 = vstv %s2921_s11 }
 0x116   : > { %v972_v8 = vmul.f32 %v2926_v33, %v2372_v25  ;;  %v771_v24 = vadd.f32 %v770_v7, %v718_v45  ;;  %v823_v50 = vmul.f32 %v2928_v46, %v2353_v18  ;;  %v1022_v56 = vadd.f32 %v1021_v42, %v969_v43 }
 0x117   : > { %v920_v36 = vadd.f32 %v919_v6, %v867_v2  ;;  %v2929_v58 = vstv %s2923_s7  ;;  %v653_v11 = vadd.f32 %v2344_v49, %v595_v27  ;;  %1100 = vrot.lane.b32.xlu1 %v1095_v34, %s1560_s6  ;;  %1098 = vrot.lane.b32.xlu0 %v1091_v12, %s1560_s6  ;;  %v810_v47 = vstv %s2472_s26  ;;  %v2931_v49 = vld [vmem:[#allocation78_spill] sm:$0xff] }
 0x118   : > { %v1025_v0 = vmul.f32 %v2929_v58, %v2391_v26  ;;  %v824_v5 = vadd.f32 %v823_v50, %v771_v24  ;;  %v857_v22 = vstv %s2481_s30  ;;  %v1028_v32 = vstv %s2486_s10 }
 0x119   : > { %v973_v19 = vadd.f32 %v972_v8, %v920_v36  ;;  %v706_v37 = vadd.f32 %v2381_v15, %v653_v11  ;;  %v758_v59 = vmul.f32 %v757_v31, %v2337_v44  ;;  %v1144_v10 = vrot.slane %v1022_v56, %v2904_v21 }
 0x11a   : > { %v1140_v48 = vrot.slane %v1022_v56, %v2905_v28  ;;  %v871_v53 = vadd.f32 %v2931_v49, %v824_v5  ;;  %v2932_v17 = vstv %s2930_s12  ;;  %v811_v3 = vmul.f32 %v810_v47, %v2353_v18 }
 0x11b   : > { %v923_v55 = vmul.f32 %v2932_v17, %v2357_v35  ;;  %v1026_v54 = vadd.f32 %v1025_v0, %v973_v19  ;;  %v759_v20 = vadd.f32 %v758_v59, %v706_v37  ;;  %v858_v15 = vmul.f32 %v857_v22, %v2933_v29  ;;  %1149 = vrot.lane.b32.xlu1 %v1144_v10, %s1561_s28 }
 0x11c   : > { %1147 = vrot.lane.b32.xlu0 %v1140_v48, %s1561_s28  ;;  %v976_v60 = vmul.f32 %v975_v39, %v2372_v25  ;;  %v1029_v23 = vmul.f32 %v1028_v32, %v2391_v26  ;;  %v910_v30 = vstv %s2504_s24  ;;  %v963_v42 = vstv %s2511_s4 }
 0x11d   : > { %v924_v44 = vadd.f32 %v923_v55, %v871_v53  ;;  %v812_v51 = vadd.f32 %v811_v3, %v759_v20  ;;  %v1172_v13 = vrot.slane %v1026_v54, %v2904_v21  ;;  %v1168_v52 = vrot.slane %v1026_v54, %v2905_v28 }
 0x11e   : > { %v1016_v18 = vstv %s2518_s2  ;;  %v911_v16 = vmul.f32 %v910_v30, %v2357_v35  ;;  %v964_v39 = vmul.f32 %v963_v42, %v2372_v25  ;;  %vm1074_vm5 = vcmp.lt.s32.totalorder %v1814_v41, 32 }
 0x11f   : > { %v977_v62 = vadd.f32 %v976_v60, %v924_v44  ;;  %v859_v38 = vadd.f32 %v858_v15, %v812_v51  ;;  %1177 = vrot.lane.b32.xlu1 %v1172_v13, %s1562_s5  ;;  %v1017_v31 = vmul.f32 %v1016_v18, %v2391_v26  ;;  %vm1046_vm8 = vcmp.lt.s32.totalorder %v1814_v41, 48 }
 0x120   : > { %1175 = vrot.lane.b32.xlu0 %v1168_v52, %s1562_s5  ;;  %vm1077_vm11 = vcmp.ge.s32.totalorder %v1814_v41, 32  ;;  %vm1102_vm15 = vcmp.lt.s32.totalorder %v1814_v41, 16  ;;  %vm1105_vm0 = vcmp.ge.s32.totalorder %v1814_v41, 16  ;;  %v228_v34 = vadd.s32 128, %v1814_v41 }
 0x121   : > { %v1030_v1 = vadd.f32 %v1029_v23, %v977_v62  ;;  %v912_v61 = vadd.f32 %v911_v16, %v859_v38  ;;  %vm1207_vm9 = vcmp.lt.s32.totalorder %v1814_v41, 80 }
 0x122   : > { %vm1157_vm3 = vcmp.lt.s32.totalorder %v228_v34, 240  ;;  %vm1185_vm7 = vcmp.lt.s32.totalorder %v228_v34, 224  ;;  %vm1213_vm10 = vcmp.lt.s32.totalorder %v228_v34, 208 }
 0x123   : > { %v1200_v9 = vrot.slane %v1030_v1, %v2904_v21  ;;  %v1196_v4 = vrot.slane %v1030_v1, %v2905_v28  ;;  %v965_v6 = vadd.f32 %v964_v39, %v912_v61  ;;  %v2936_v1 = vlaneseq }
 0x125   : > { %1205 = vrot.lane.b32.xlu1 %v1200_v9, %s1563_s19  ;;  %1203 = vrot.lane.b32.xlu0 %v1196_v4, %s1563_s19  ;;  %v1018_v45 = vadd.f32 %v1017_v31, %v965_v6  ;;  %vm1252_vm13 = vcmp.lt.s32.totalorder %v2936_v1, 256 }
 0x127   : > { %v1129_v35 = vrot.slane %v1018_v45, %v2904_v21  ;;  %v1125_v14 = vrot.slane %v1018_v45, %v2905_v28 }
 0x17d   : > { %v1045_v7 = vpop.permute.xlu1 %1044 }
 0x17e   : > { %v1043_v43 = vpop.permute.xlu0 %1042 }
 0x17f   : > { %v1048_v2 = vsel %vm1046_vm8, %v1045_v7, %v1043_v43  ;;  %v1047_v21 = vsel %vm1046_vm8, %v1043_v43, %v1045_v7 }
 0x180   : > { %v1055_v28 = vsel %vm1049_vm12, %v1048_v2, 0.0 }
 0x182   : > { %v1073_v25 = vpop.permute.xlu1 %1072 }
 0x183   : > { %v1071_v26 = vpop.permute.xlu0 %1070 }
 0x184   : > { %v1076_v63 = vsel %vm1074_vm5, %v1073_v25, %v1071_v26  ;;  %v1075_v33 = vsel %vm1074_vm5, %v1071_v26, %v1073_v25 }
 0x185   : > { %v1083_v8 = vsel %vm1077_vm11, %v1076_v63, 0.0  ;;  %v1086_v24 = vadd.f32 %v1075_v33, %v1047_v21 }
 0x186   : > { %v1085_v12 = vadd.f32 %v1083_v8, %v1055_v28 }
 0x189   : > { %v1101_v57 = vpop.permute.xlu1 %1100  ;;  %v1099_v27 = vpop.permute.xlu0 %1098 }
 0x18a   : > { %v1103_v46 = vsel %vm1102_vm15, %v1099_v27, %v1101_v57  ;;  %v1104_v50 = vsel %vm1102_vm15, %v1101_v57, %v1099_v27 }
 0x18b   : > { %v1111_v56 = vsel %vm1105_vm0, %v1104_v50, 0.0  ;;  %v1114_v58 = vadd.f32 %v1103_v46, %v1086_v24 }
 0x18c   : > { %v1113_v36 = vadd.f32 %v1111_v56, %v1085_v12 }
 0x18d   : > { %v1150_v0 = vpop.permute.xlu1 %1149  ;;  %v1135_v19 = vadd.f32 %v1129_v35, %v1114_v58 }
 0x18e   : > { %v1148_v11 = vpop.permute.xlu0 %1147  ;;  %v1134_v5 = vadd.f32 %v1125_v14, %v1113_v36 }
 0x18f   : > { %v1152_v47 = vsel %vm1151_vm2, %v1148_v11, %v1150_v0  ;;  %v1153_v22 = vsel %vm1151_vm2, %v1150_v0, %v1148_v11 }
 0x190   : > { %v1161_v32 = vsel %vm1157_vm3, %v1153_v22, 0.0  ;;  %v1162_v37 = vadd.f32 %v1152_v47, %v1134_v5 }
 0x191   : > { %v1178_v59 = vpop.permute.xlu1 %1177  ;;  %v1163_v17 = vadd.f32 %v1161_v32, %v1135_v19 }
 0x192   : > { %v1176_v10 = vpop.permute.xlu0 %1175 }
 0x193   : > { %v1180_v48 = vsel %vm1179_vm6, %v1176_v10, %v1178_v59  ;;  %v1181_v49 = vsel %vm1179_vm6, %v1178_v59, %v1176_v10 }
 0x194   : > { %v1189_v53 = vsel %vm1185_vm7, %v1181_v49, 0.0  ;;  %v1190_v55 = vadd.f32 %v1180_v48, %v1162_v37 }
 0x195   : > { %v1191_v3 = vadd.f32 %v1189_v53, %v1163_v17 }
 0x197   : > { %v1206_v54 = vpop.permute.xlu1 %1205  ;;  %v1204_v20 = vpop.permute.xlu0 %1203 }
 0x198   : > { %v1208_v29 = vsel %vm1207_vm9, %v1204_v20, %v1206_v54  ;;  %v1209_v15 = vsel %vm1207_vm9, %v1206_v54, %v1204_v20 }
 0x199   : > { %v1217_v44 = vsel %vm1213_vm10, %v1209_v15, 0.0  ;;  %v1218_v60 = vadd.f32 %v1208_v29, %v1190_v55 }
 0x19a   : > { %v1219_v23 = vadd.f32 %v1217_v44, %v1191_v3 }
 0x19b   : > { %v1445_v30 = vmul.f32 -1.442695, %v1218_v60 }
 0x19c   : > { %v1446_v51 = vmul.f32 -1.442695, %v1219_v23 }
 0x19d   : > { %1499 = vpow2.f32 %v1445_v30 }
 0x19e   : > { %1501 = vpow2.f32 %v1446_v51 }
 0x1aa   : > { %v1500_v42 = vpop.eup %1499 }
 0x1ab   : > { %v1502_v13 = vpop.eup %1501  ;;  %v1226_v52 = vadd.f32 1.0, %v1500_v42 }
 0x1ac   : > { %v1227_v41 = vadd.f32 1.0, %v1502_v13 }
 0x1ad   : > { %1503 = vrcp.f32 %v1226_v52 }
 0x1ae   : > { %1505 = vrcp.f32 %v1227_v41 }
 0x1ba   : > { %v1504_v62 = vpop.eup %1503 }
 0x1bb   : > { %v1506_v18 = vpop.eup %1505 }
 0x1bc   : > { %v1234_v38 = vcombine.low %v1504_v62, %v1506_v18 }
 0x1be   : > { %v1241_v16 = vrot.slane %v1234_v38, %v1809_v40 }
 0x1c0   : > { %v1248_v61 = vrot.slane %v1241_v16, %v1809_v40 }
 0x1c2   : > { %1254 = vst.msk [vmem:[%s208_s1] sm:$0x3] %vm1252_vm13, %v1248_v61 }
 0x1c3 PF: > { %s2937_s20 = sld [smem:[#allocation8_spill]] }
 0x1c4   : > { %s2938_s12 = sld [smem:[#allocation7_spill]] }
 0x1c5   : > { %s2939_s13 = sld [smem:[#allocation9_spill]] }
 0x1c9   : > { %s14_s14 = sadd.s32 1, %s2937_s20  }
 0x1ca   : > { %p11_p2 = scmp.ge.s32.totalorder %s14_s14, 4  }
 0x1cc   :  { %13 = sbr.rel (!%p11_p2) target bundleno = 7 (0x7), region = 75 }
 0x1d1   :  { %1274 = vsyncpa [#allocation5], 1 }
 0x1d2   :  { %1276 = vsyncpa [#allocation5 + $0x1], 1 }

</bundles_post_ra>
